<compile_context>
chip_gen: v5e
topology: v5e:2x2
jax: 0.10.0
libtpu: 0.0.40
codegen_flags: <defaults>
</compile_context>

<pallas_src>
import functools

import jax
import jax.numpy as jnp
from jax.experimental import pallas as pl
from jax.experimental.pallas import tpu as pltpu

THRESH = 0.3
DECAY = 0.2

# Per-array block byte budget. Small enough to sit comfortably inside every
# generation's default scoped-VMEM limit (v7x only has 64 MiB physical VMEM),
# large enough to amortize the per-grid-step overhead. For very large tiles on
# v6e, raise pltpu.CompilerParams(vmem_limit_bytes=...) alongside this budget.
_BLOCK_BUDGET_BYTES = 2 * 1024 * 1024


def _largest_divisor_leq(n, cap):
    cap = int(max(1, min(n, cap)))
    for d in range(cap, 0, -1):
        if n % d == 0:
            return d
    return 1


def _snn_avgpool_kernel(inv_ref, x_ref, mem_ref, spike_ref, mem_out_ref,
                        *scratch, k, s, p, H, W, Hout, Wout):
    # inv_ref  : (1, Hout, Wout, 1)   reciprocal window counts (grid-resident)
    # x_ref    : (Nb, H, W, C)        input block (channels on the lane axis)
    # mem_ref  : (Nb, Hout, Wout, C)  previous membrane potential
    Nb = x_ref.shape[0]
    C = x_ref.shape[-1]
    Hp, Wp = H + 2 * p, W + 2 * p

    if p > 0:
        # Fused zero padding: refresh the thin zero border every step (safe
        # under megacore grid splitting), then copy the live interior. VMEM-only
        # traffic -- no padded copy of x ever touches HBM.
        xp_ref, = scratch
        zrow = jnp.zeros((Nb, p, Wp, C), jnp.float32)
        zcol = jnp.zeros((Nb, Hp, p, C), jnp.float32)
        xp_ref[:, 0:p, :, :] = zrow
        xp_ref[:, p + H:Hp, :, :] = zrow
        xp_ref[:, :, 0:p, :] = zcol
        xp_ref[:, :, p + W:Wp, :] = zcol
        xp_ref[:, p:p + H, p:p + W, :] = x_ref[...].astype(jnp.float32)
        xp = xp_ref[...]
    else:
        xp = x_ref[...].astype(jnp.float32)

    # --- separable window sum: k row-taps then k column-taps (2k adds) ---
    # H taps shift a non-tiled axis (free); W taps are sublane shifts; C stays
    # put on the lane axis.
    rowsum = jax.lax.slice(
        xp, (0, 0, 0, 0), (Nb, (Hout - 1) * s + 1, Wp, C), (1, s, 1, 1))
    for dh in range(1, k):
        rowsum = rowsum + jax.lax.slice(
            xp, (0, dh, 0, 0), (Nb, dh + (Hout - 1) * s + 1, Wp, C),
            (1, s, 1, 1))
    acc = jax.lax.slice(
        rowsum, (0, 0, 0, 0), (Nb, Hout, (Wout - 1) * s + 1, C), (1, 1, s, 1))
    for dw in range(1, k):
        acc = acc + jax.lax.slice(
            rowsum, (0, 0, dw, 0), (Nb, Hout, dw + (Wout - 1) * s + 1, C),
            (1, 1, s, 1))

    # --- LIF membrane update + spike ---
    # count_include_pad=False handled by the precomputed reciprocal counts.
    mem_new = mem_ref[...] + acc * inv_ref[...]
    fired = mem_new > THRESH
    spike_ref[...] = jnp.where(fired, 1.0, 0.0).astype(spike_ref.dtype)
    mem_out_ref[...] = jnp.where(fired, 0.0, mem_new * DECAY).astype(
        mem_out_ref.dtype)


@functools.partial(jax.jit, static_argnames=("kernel_size", "stride", "padding"))
def snn_avgpooling_nhwc(x, mem, *, kernel_size, stride, padding):
    """One forward step, channels-last layout (preferred: lane-dense).

    x   : (N, H, W, C) float (any float dtype; cast to f32 in-kernel)
    mem : (N, Hout, Wout, C) float32 or None (treated as zeros)
    returns (spike, new_mem), both (N, Hout, Wout, C) float32.
    """
    N, H, W, C = x.shape
    k, s, p = kernel_size, stride, padding
    Hout = (H + 2 * p - k) // s + 1
    Wout = (W + 2 * p - k) // s + 1
    Hp, Wp = H + 2 * p, W + 2 * p

    if mem is None:
        mem = jnp.zeros((N, Hout, Wout, C), jnp.float32)
    mem = mem.astype(jnp.float32)

    # Grid-resident reciprocal of the count_include_pad=False window counts
    # (hoisted out of the kernel: computed once, multiplied in-kernel).
    oh = jnp.arange(Hout, dtype=jnp.int32)
    ow = jnp.arange(Wout, dtype=jnp.int32)
    cnt_h = jnp.minimum(oh * s - p + k, H) - jnp.maximum(oh * s - p, 0)
    cnt_w = jnp.minimum(ow * s - p + k, W) - jnp.maximum(ow * s - p, 0)
    inv_cnt = 1.0 / (cnt_h[:, None] * cnt_w[None, :]).astype(jnp.float32)
    inv_cnt = inv_cnt.reshape(1, Hout, Wout, 1)

    # Fold as many batch images per grid step as fit the per-block budget.
    plane_bytes = max(Hp * Wp, Hout * Wout) * C * 4
    Nb = _largest_divisor_leq(N, _BLOCK_BUDGET_BYTES // max(1, plane_bytes))
    grid = (N // Nb,)

    kernel = functools.partial(
        _snn_avgpool_kernel, k=k, s=s, p=p, H=H, W=W, Hout=Hout, Wout=Wout)

    out_block = pl.BlockSpec((Nb, Hout, Wout, C), lambda n: (n, 0, 0, 0))
    scratch_shapes = (
        [pltpu.VMEM((Nb, Hp, Wp, C), jnp.float32)] if p > 0 else [])

    spike, new_mem = pl.pallas_call(
        kernel,
        out_shape=(
            jax.ShapeDtypeStruct((N, Hout, Wout, C), jnp.float32),
            jax.ShapeDtypeStruct((N, Hout, Wout, C), jnp.float32),
        ),
        grid_spec=pltpu.PrefetchScalarGridSpec(
            num_scalar_prefetch=0,
            grid=grid,
            in_specs=[
                # inv_cnt: same block every step -> stays resident in VMEM.
                pl.BlockSpec((1, Hout, Wout, 1), lambda n: (0, 0, 0, 0)),
                pl.BlockSpec((Nb, H, W, C), lambda n: (n, 0, 0, 0)),
                out_block,
            ],
            out_specs=[out_block, out_block],
            scratch_shapes=scratch_shapes,
        ),
        # Recurrent membrane state updated in place: mem (input 2) -> new_mem
        # (output 1); avoids a fresh HBM state buffer per SNN time step.
        input_output_aliases={2: 1},
        compiler_params=pltpu.CompilerParams(
            dimension_semantics=("parallel",)),
    )(inv_cnt, x, mem)

    return spike, new_mem


@functools.partial(jax.jit, static_argnames=("kernel_size", "stride", "padding"))
def snn_avgpooling(x, mem, *, kernel_size, stride, padding):
    """NCHW interface matching the PyTorch module (layout plumbing only).

    x   : (N, C, H, W); mem : (N, C, Hout, Wout) or None.
    returns (spike, new_mem) in NCHW. For best performance carry the state in
    NHWC and call snn_avgpooling_nhwc directly.
    """
    x_nhwc = jnp.transpose(x, (0, 2, 3, 1))
    mem_nhwc = None if mem is None else jnp.transpose(mem, (0, 2, 3, 1))
    spike, new_mem = snn_avgpooling_nhwc(
        x_nhwc, mem_nhwc, kernel_size=kernel_size, stride=stride,
        padding=padding)
    return (jnp.transpose(spike, (0, 3, 1, 2)),
            jnp.transpose(new_mem, (0, 3, 1, 2)))


# ---------------- pure-JAX reference (for a correctness check) ----------------
def _ref_avgpool_nopad(x, k, s, p):
    summed = jax.lax.reduce_window(
        x, 0.0, jax.lax.add, (1, 1, k, k), (1, 1, s, s),
        padding=((0, 0), (0, 0), (p, p), (p, p)))
    counts = jax.lax.reduce_window(
        jnp.ones_like(x), 0.0, jax.lax.add, (1, 1, k, k), (1, 1, s, s),
        padding=((0, 0), (0, 0), (p, p), (p, p)))
    return summed / counts


def _ref_step(x, mem, k, s, p):
    pooled = _ref_avgpool_nopad(x, k, s, p)
    if mem is None:
        mem = jnp.zeros_like(pooled)
    mem = mem + pooled
    spike = (mem > THRESH).astype(jnp.float32)
    mem = mem * DECAY * (1.0 - spike)
    return spike, mem


# TODO(synk): ActFun_changeable.backward (surrogate gradient) is training-only
# and is not part of this forward-pass kernel.

if __name__ == "__main__":
    key = jax.random.PRNGKey(0)
    N, C, H, W = 2, 4, 16, 16
    kernel_size, stride, padding = 3, 1, 1  # typical DARTS avg_pool_3x3

    k1, k2 = jax.random.split(key)
    x1 = jax.random.normal(k1, (N, C, H, W), dtype=jnp.float32)
    x2 = jax.random.normal(k2, (N, C, H, W), dtype=jnp.float32)

    # step 1 (mem is None -> zeros), step 2 carries the membrane state
    spike1, mem1 = snn_avgpooling(x1, None, kernel_size=kernel_size,
                                  stride=stride, padding=padding)
    spike2, mem2 = snn_avgpooling(x2, mem1, kernel_size=kernel_size,
                                  stride=stride, padding=padding)
    jax.block_until_ready((spike1, mem1, spike2, mem2))

    # verify against a pure-JAX reference of the PyTorch semantics
    r_spike1, r_mem1 = _ref_step(x1, None, kernel_size, stride, padding)
    r_spike2, r_mem2 = _ref_step(x2, r_mem1, kernel_size, stride, padding)
    assert jnp.allclose(spike1, r_spike1)
    assert jnp.allclose(spike2, r_spike2)
    assert jnp.allclose(mem2, r_mem2, atol=1e-5)

    print("KERNEL_OK")
</pallas_src>

<mosaic_0001>
module attributes {stable_mosaic.version = 11 : i64} {
  func.func @_snn_avgpool_kernel(%arg0: i32, %arg1: memref<1x16x16x1xf32, #tpu.memory_space<vmem>>, %arg2: memref<2x16x16x4xf32, #tpu.memory_space<vmem>>, %arg3: memref<2x16x16x4xf32, #tpu.memory_space<vmem>>, %arg4: memref<2x16x16x4xf32, #tpu.memory_space<vmem>>, %arg5: memref<2x16x16x4xf32, #tpu.memory_space<vmem>>, %arg6: memref<2x18x18x4xf32, #tpu.memory_space<vmem>>) attributes {dimension_semantics = [#tpu.dimension_semantics<parallel>], iteration_bounds = array<i64: 1>, scalar_prefetch = 0 : i64, scratch_operands = 1 : i64, tpu.core_type = #tpu.core_type<tc>, window_params = [{pipeline_mode = #tpu.pipeline_mode<synchronous>, transform_indices = @transform_0, window_bounds = array<i64: 1, 16, 16, 1>}, {transform_indices = @transform_1, window_bounds = array<i64: 2, 16, 16, 4>}, {transform_indices = @transform_2, window_bounds = array<i64: 2, 16, 16, 4>}, {transform_indices = @transform_3, window_bounds = array<i64: 2, 16, 16, 4>}, {transform_indices = @transform_4, window_bounds = array<i64: 2, 16, 16, 4>}]} {
    %cst = arith.constant 0.000000e+00 : f32
    %0 = vector.broadcast %cst : f32 to vector<2x1x18x4xf32>
    %cst_0 = arith.constant 0.000000e+00 : f32
    %1 = vector.broadcast %cst_0 : f32 to vector<2x18x1x4xf32>
    %c0 = arith.constant 0 : index
    %c0_1 = arith.constant 0 : index
    %c0_2 = arith.constant 0 : index
    %c0_3 = arith.constant 0 : index
    %2 = vector.load %arg6[%c0, %c0_1, %c0_2, %c0_3] : memref<2x18x18x4xf32, #tpu.memory_space<vmem>>, vector<2x1x18x4xf32>
    tpu.vector_store %arg6[%c0, %c0_1, %c0_2, %c0_3], %0 {strides = array<i32>} : memref<2x18x18x4xf32, #tpu.memory_space<vmem>>, vector<2x1x18x4xf32>,
    %c0_4 = arith.constant 0 : index
    %c17 = arith.constant 17 : index
    %c0_5 = arith.constant 0 : index
    %c0_6 = arith.constant 0 : index
    %3 = vector.load %arg6[%c0_4, %c17, %c0_5, %c0_6] : memref<2x18x18x4xf32, #tpu.memory_space<vmem>>, vector<2x1x18x4xf32>
    tpu.vector_store %arg6[%c0_4, %c17, %c0_5, %c0_6], %0 {strides = array<i32>} : memref<2x18x18x4xf32, #tpu.memory_space<vmem>>, vector<2x1x18x4xf32>,
    %c0_7 = arith.constant 0 : index
    %c0_8 = arith.constant 0 : index
    %c0_9 = arith.constant 0 : index
    %c0_10 = arith.constant 0 : index
    %4 = vector.load %arg6[%c0_7, %c0_8, %c0_9, %c0_10] : memref<2x18x18x4xf32, #tpu.memory_space<vmem>>, vector<2x18x1x4xf32>
    tpu.vector_store %arg6[%c0_7, %c0_8, %c0_9, %c0_10], %1 {strides = array<i32>} : memref<2x18x18x4xf32, #tpu.memory_space<vmem>>, vector<2x18x1x4xf32>,
    %c0_11 = arith.constant 0 : index
    %c0_12 = arith.constant 0 : index
    %c17_13 = arith.constant 17 : index
    %c0_14 = arith.constant 0 : index
    %5 = vector.load %arg6[%c0_11, %c0_12, %c17_13, %c0_14] : memref<2x18x18x4xf32, #tpu.memory_space<vmem>>, vector<2x18x1x4xf32>
    tpu.vector_store %arg6[%c0_11, %c0_12, %c17_13, %c0_14], %1 {strides = array<i32>} : memref<2x18x18x4xf32, #tpu.memory_space<vmem>>, vector<2x18x1x4xf32>,
    %c0_15 = arith.constant 0 : index
    %c0_16 = arith.constant 0 : index
    %c0_17 = arith.constant 0 : index
    %c0_18 = arith.constant 0 : index
    %6 = vector.load %arg2[%c0_15, %c0_16, %c0_17, %c0_18] : memref<2x16x16x4xf32, #tpu.memory_space<vmem>>, vector<2x16x16x4xf32>
    %c0_19 = arith.constant 0 : index
    %c1 = arith.constant 1 : index
    %c1_20 = arith.constant 1 : index
    %c0_21 = arith.constant 0 : index
    %7 = vector.load %arg6[%c0_19, %c1, %c1_20, %c0_21] : memref<2x18x18x4xf32, #tpu.memory_space<vmem>>, vector<2x16x16x4xf32>
    tpu.vector_store %arg6[%c0_19, %c1, %c1_20, %c0_21], %6 {strides = array<i32>} : memref<2x18x18x4xf32, #tpu.memory_space<vmem>>, vector<2x16x16x4xf32>,
    %c0_22 = arith.constant 0 : index
    %c0_23 = arith.constant 0 : index
    %c0_24 = arith.constant 0 : index
    %c0_25 = arith.constant 0 : index
    %8 = vector.load %arg6[%c0_22, %c0_23, %c0_24, %c0_25] : memref<2x18x18x4xf32, #tpu.memory_space<vmem>>, vector<2x18x18x4xf32>
    %9 = vector.extract_strided_slice %8 {offsets = [0, 0, 0, 0], sizes = [2, 16, 18, 4], strides = [1, 1, 1, 1]} : vector<2x18x18x4xf32> to vector<2x16x18x4xf32>
    %10 = vector.extract_strided_slice %8 {offsets = [0, 1, 0, 0], sizes = [2, 16, 18, 4], strides = [1, 1, 1, 1]} : vector<2x18x18x4xf32> to vector<2x16x18x4xf32>
    %11 = arith.addf %9, %10 : vector<2x16x18x4xf32>
    %12 = vector.extract_strided_slice %8 {offsets = [0, 2, 0, 0], sizes = [2, 16, 18, 4], strides = [1, 1, 1, 1]} : vector<2x18x18x4xf32> to vector<2x16x18x4xf32>
    %13 = arith.addf %11, %12 : vector<2x16x18x4xf32>
    %14 = vector.extract_strided_slice %13 {offsets = [0, 0, 0, 0], sizes = [2, 16, 16, 4], strides = [1, 1, 1, 1]} : vector<2x16x18x4xf32> to vector<2x16x16x4xf32>
    %15 = vector.extract_strided_slice %13 {offsets = [0, 0, 1, 0], sizes = [2, 16, 16, 4], strides = [1, 1, 1, 1]} : vector<2x16x18x4xf32> to vector<2x16x16x4xf32>
    %16 = arith.addf %14, %15 : vector<2x16x16x4xf32>
    %17 = vector.extract_strided_slice %13 {offsets = [0, 0, 2, 0], sizes = [2, 16, 16, 4], strides = [1, 1, 1, 1]} : vector<2x16x18x4xf32> to vector<2x16x16x4xf32>
    %18 = arith.addf %16, %17 : vector<2x16x16x4xf32>
    %c0_26 = arith.constant 0 : index
    %c0_27 = arith.constant 0 : index
    %c0_28 = arith.constant 0 : index
    %c0_29 = arith.constant 0 : index
    %19 = vector.load %arg3[%c0_26, %c0_27, %c0_28, %c0_29] : memref<2x16x16x4xf32, #tpu.memory_space<vmem>>, vector<2x16x16x4xf32>
    %c0_30 = arith.constant 0 : index
    %c0_31 = arith.constant 0 : index
    %c0_32 = arith.constant 0 : index
    %c0_33 = arith.constant 0 : index
    %20 = vector.load %arg1[%c0_30, %c0_31, %c0_32, %c0_33] : memref<1x16x16x1xf32, #tpu.memory_space<vmem>>, vector<1x16x16x1xf32>
    %21 = vector.broadcast %20 : vector<1x16x16x1xf32> to vector<2x16x16x4xf32>
    %22 = arith.mulf %18, %21 : vector<2x16x16x4xf32>
    %23 = arith.addf %19, %22 : vector<2x16x16x4xf32>
    %cst_34 = arith.constant 3.000000e-01 : f32
    %24 = vector.broadcast %cst_34 : f32 to vector<2x16x16x4xf32>
    %25 = arith.cmpf ogt, %23, %24 : vector<2x16x16x4xf32>
    %cst_35 = arith.constant 1.000000e+00 : f32
    %cst_36 = arith.constant 0.000000e+00 : f32
    %26 = vector.broadcast %cst_35 : f32 to vector<2x16x16x4xf32>
    %27 = vector.broadcast %cst_36 : f32 to vector<2x16x16x4xf32>
    %28 = arith.select %25, %26, %27 : vector<2x16x16x4xi1>, vector<2x16x16x4xf32>
    %c0_37 = arith.constant 0 : index
    %c0_38 = arith.constant 0 : index
    %c0_39 = arith.constant 0 : index
    %c0_40 = arith.constant 0 : index
    %29 = vector.load %arg4[%c0_37, %c0_38, %c0_39, %c0_40] : memref<2x16x16x4xf32, #tpu.memory_space<vmem>>, vector<2x16x16x4xf32>
    tpu.vector_store %arg4[%c0_37, %c0_38, %c0_39, %c0_40], %28 {strides = array<i32>} : memref<2x16x16x4xf32, #tpu.memory_space<vmem>>, vector<2x16x16x4xf32>,
    %cst_41 = arith.constant 2.000000e-01 : f32
    %30 = vector.broadcast %cst_41 : f32 to vector<2x16x16x4xf32>
    %31 = arith.mulf %23, %30 : vector<2x16x16x4xf32>
    %cst_42 = arith.constant 0.000000e+00 : f32
    %32 = vector.broadcast %cst_42 : f32 to vector<2x16x16x4xf32>
    %33 = arith.select %25, %32, %31 : vector<2x16x16x4xi1>, vector<2x16x16x4xf32>
    %c0_43 = arith.constant 0 : index
    %c0_44 = arith.constant 0 : index
    %c0_45 = arith.constant 0 : index
    %c0_46 = arith.constant 0 : index
    %34 = vector.load %arg5[%c0_43, %c0_44, %c0_45, %c0_46] : memref<2x16x16x4xf32, #tpu.memory_space<vmem>>, vector<2x16x16x4xf32>
    tpu.vector_store %arg5[%c0_43, %c0_44, %c0_45, %c0_46], %33 {strides = array<i32>} : memref<2x16x16x4xf32, #tpu.memory_space<vmem>>, vector<2x16x16x4xf32>,
    return
  }
  func.func @transform_0(%arg0: i32) -> (i32, i32, i32, i32) {
    %c0_i32 = arith.constant 0 : i32
    %c0_i32_0 = arith.constant 0 : i32
    %c0_i32_1 = arith.constant 0 : i32
    %c0_i32_2 = arith.constant 0 : i32
    %c0_i32_3 = arith.constant 0 : i32
    return %c0_i32, %c0_i32_0, %c0_i32_1, %c0_i32_2 : i32, i32, i32, i32
  }
  func.func @transform_1(%arg0: i32) -> (i32, i32, i32, i32) {
    %c0_i32 = arith.constant 0 : i32
    %c0_i32_0 = arith.constant 0 : i32
    %c0_i32_1 = arith.constant 0 : i32
    %c0_i32_2 = arith.constant 0 : i32
    return %arg0, %c0_i32, %c0_i32_0, %c0_i32_1 : i32, i32, i32, i32
  }
  func.func @transform_2(%arg0: i32) -> (i32, i32, i32, i32) {
    %c0_i32 = arith.constant 0 : i32
    %c0_i32_0 = arith.constant 0 : i32
    %c0_i32_1 = arith.constant 0 : i32
    %c0_i32_2 = arith.constant 0 : i32
    return %arg0, %c0_i32, %c0_i32_0, %c0_i32_1 : i32, i32, i32, i32
  }
  func.func @transform_3(%arg0: i32) -> (i32, i32, i32, i32) {
    %c0_i32 = arith.constant 0 : i32
    %c0_i32_0 = arith.constant 0 : i32
    %c0_i32_1 = arith.constant 0 : i32
    %c0_i32_2 = arith.constant 0 : i32
    return %arg0, %c0_i32, %c0_i32_0, %c0_i32_1 : i32, i32, i32, i32
  }
  func.func @transform_4(%arg0: i32) -> (i32, i32, i32, i32) {
    %c0_i32 = arith.constant 0 : i32
    %c0_i32_0 = arith.constant 0 : i32
    %c0_i32_1 = arith.constant 0 : i32
    %c0_i32_2 = arith.constant 0 : i32
    return %arg0, %c0_i32, %c0_i32_0, %c0_i32_1 : i32, i32, i32, i32
  }
}

</mosaic_0001>

<bundles_post_ra>
// kernel: snn_avgpooling_nhwc.1
= control target key start
LH: loop header
LB: loop body
LE: loop exit
PB: predicated region body
PF: predicated region fallthrough
CT: control target
= control target key end

     0   :  { %v2039_v0 = vmov 0   ;;  %vm31_vm0 = vcmask 24576   ;;  %v4250_v22 = vmov 0.0   ;;  %vm16_vm1 = vcmask 31744   ;;  %s4223_s0 = inlined_call_operand.vmem [shape: f32[1,16,16,1], index: 0, kind: input, shape index: {}]   ;;  %s4224_s1 = inlined_call_operand.vmem [shape: f32[2,16,16,4], index: 1, kind: input, shape index: {}]   ;;  %s4225_s2 = inlined_call_operand.vmem [shape: f32[2,16,16,4], index: 2, kind: input, shape index: {}, may-alias: {2,4}]   ;;  %s4226_s3 = inlined_call_operand.vmem [shape: f32[2,16,16,4], index: 3, kind: output, shape index: {0}]   ;;  %s4227_s4 = inlined_call_operand.vmem [shape: f32[2,16,16,4], index: 4, kind: output, shape index: {1}, may-alias: {2,4}]  }
   0x1   :  { %1987 = vset.pattern.permute.xlu2 %v2039_v0  ;;  %1986 = vset.pattern.permute.xlu1 %v2039_v0  ;;  %v1275_v1 = vld [vmem:[%s4223_s0 + $0x20] sm:$0xff]  ;;  %v1273_v2 = vld [vmem:[%s4223_s0 + $0x10] sm:$0xff]  ;;  %v1276_v4 = vld [vmem:[%s4223_s0 + $0x28] sm:$0xff]  ;;  %34 = vst.msk [vmem:[#allocation2 + $0x30] sm:$0x1] %vm31_vm0, %v4250_v22  ;;  %vm629_vm2 = vcmask 1046528  }
   0x2   :  { %v1271_v3 = vld [vmem:[%s4223_s0] sm:$0xff]  ;;  %1985 = vset.pattern.permute.xlu0 %v2039_v0  ;;  %1325 = vperm.xlu2 %1987, %v1275_v1   ;;  %v1274_v5 = vld [vmem:[%s4223_s0 + $0x18] sm:$0xff]  ;;  %v1272_v6 = vld [vmem:[%s4223_s0 + $0x8] sm:$0xff]  ;;  %35 = vst.msk [vmem:[#allocation2 + $0x48] sm:$0x1] %vm31_vm0, %v4250_v22  ;;  %vm918_vm3 = vcmask 1045504  }
   0x3   :  { %1315 = vperm.xlu1 %1986, %v1273_v2   ;;  %1305 = vperm.xlu0 %1985, %v1271_v3   ;;  %v1279_v7 = vld [vmem:[%s4223_s0 + $0x40] sm:$0xff]  ;;  %v1278_v8 = vld [vmem:[%s4223_s0 + $0x38] sm:$0xff]  ;;  %v1277_v9 = vld [vmem:[%s4223_s0 + $0x30] sm:$0xff]  ;;  %36 = vst.msk [vmem:[#allocation2 + $0x60] sm:$0x1] %vm31_vm0, %v4250_v22  ;;  %vm19_vm8 = vcmask 25600  }
   0x4   :  { %v1282_v10 = vld [vmem:[%s4223_s0 + $0x58] sm:$0xff]  ;;  %v1281_v11 = vld [vmem:[%s4223_s0 + $0x50] sm:$0xff]  ;;  %v1280_v12 = vld [vmem:[%s4223_s0 + $0x48] sm:$0xff]  ;;  %52 = vst.msk [vmem:[#allocation2 + $0x1e0] sm:$0x1] %vm31_vm0, %v4250_v22 }
   0x5   :  { %v1285_v13 = vld [vmem:[%s4223_s0 + $0x70] sm:$0xff]  ;;  %v1284_v14 = vld [vmem:[%s4223_s0 + $0x68] sm:$0xff]  ;;  %v1283_v15 = vld [vmem:[%s4223_s0 + $0x60] sm:$0xff]  ;;  %53 = vst.msk [vmem:[#allocation2 + $0x1f8] sm:$0x1] %vm31_vm0, %v4250_v22 }
   0x6   :  { %v1288_v16 = vld [vmem:[%s4223_s0 + $0x88] sm:$0xff]  ;;  %v1287_v17 = vld [vmem:[%s4223_s0 + $0x80] sm:$0xff]  ;;  %v1286_v18 = vld [vmem:[%s4223_s0 + $0x78] sm:$0xff]  ;;  %54 = vst.msk [vmem:[#allocation2 + $0x210] sm:$0x1] %vm31_vm0, %v4250_v22 }
   0x7   :  { %v1291_v19 = vld [vmem:[%s4223_s0 + $0xa0] sm:$0xff]  ;;  %v1290_v20 = vld [vmem:[%s4223_s0 + $0x98] sm:$0xff]  ;;  %v1289_v21 = vld [vmem:[%s4223_s0 + $0x90] sm:$0xff]  ;;  %17 = vst.msk [vmem:[#allocation2] sm:$0xff] %vm16_vm1, %v4250_v22 }
   0x8   :  { %v1294_v23 = vld [vmem:[%s4223_s0 + $0xb8] sm:$0xff]  ;;  %v106_v24 = vld [vmem:[%s4224_s1 + $0x10] sm:$0xff]  ;;  %v1292_v26 = vld [vmem:[%s4223_s0 + $0xa8] sm:$0xff]  ;;  %18 = vst.msk [vmem:[#allocation2 + $0x8] sm:$0xff] %vm16_vm1, %v4250_v22 }
   0x9   :  { %v1293_v25 = vld [vmem:[%s4223_s0 + $0xb0] sm:$0xff]  ;;  %v107_v27 = vld [vmem:[%s4224_s1 + $0x18] sm:$0xff]  ;;  %v108_v28 = vld [vmem:[%s4224_s1 + $0x20] sm:$0xff]  ;;  %171 = vst.msk [vmem:[#allocation2 + $0x31] sm:$0xff] %vm16_vm1, %v106_v24 }
   0xa   :  { %1330 = vperm.xlu2 %1987, %v1276_v4   ;;  %v109_v29 = vld [vmem:[%s4224_s1 + $0x28] sm:$0xff]  ;;  %v110_v30 = vld [vmem:[%s4224_s1 + $0x30] sm:$0xff]  ;;  %172 = vst.msk [vmem:[#allocation2 + $0x39] sm:$0xff] %vm16_vm1, %v107_v27  ;;  %v111_v31 = vld [vmem:[%s4224_s1 + $0x38] sm:$0xff] }
   0xb   :  { %1320 = vperm.xlu1 %1986, %v1274_v5   ;;  %1310 = vperm.xlu0 %1985, %v1272_v6   ;;  %173 = vst.msk [vmem:[#allocation2 + $0x49] sm:$0xff] %vm16_vm1, %v108_v28  ;;  %v138_v32 = vld [vmem:[%s4224_s1 + $0x110] sm:$0xff]  ;;  %v139_v33 = vld [vmem:[%s4224_s1 + $0x118] sm:$0xff]  ;;  %v140_v35 = vld [vmem:[%s4224_s1 + $0x120] sm:$0xff] }
   0xc   :  { %174 = vst.msk [vmem:[#allocation2 + $0x51] sm:$0xff] %vm16_vm1, %v109_v29  ;;  %v1297_v34 = vld [vmem:[%s4223_s0 + $0xd0] sm:$0xff]  ;;  %v1296_v36 = vld [vmem:[%s4223_s0 + $0xc8] sm:$0xff]  ;;  %v1295_v37 = vld [vmem:[%s4223_s0 + $0xc0] sm:$0xff] }
   0xd   :  { %175 = vst.msk [vmem:[#allocation2 + $0x61] sm:$0xff] %vm16_vm1, %v110_v30  ;;  %v141_v38 = vld [vmem:[%s4224_s1 + $0x128] sm:$0xff]  ;;  %v142_v39 = vld [vmem:[%s4224_s1 + $0x130] sm:$0xff]  ;;  %v143_v40 = vld [vmem:[%s4224_s1 + $0x138] sm:$0xff] }
   0xe   :  { %176 = vst.msk [vmem:[#allocation2 + $0x69] sm:$0xff] %vm16_vm1, %v111_v31  ;;  %v1300_v47 = vld [vmem:[%s4223_s0 + $0xe8] sm:$0xff]  ;;  %v1299_v48 = vld [vmem:[%s4223_s0 + $0xe0] sm:$0xff]  ;;  %v1298_v49 = vld [vmem:[%s4223_s0 + $0xd8] sm:$0xff] }
   0xf   :  { %203 = vst.msk [vmem:[#allocation2 + $0x1e1] sm:$0xff] %vm16_vm1, %v138_v32  ;;  %v1302_v4 = vld [vmem:[%s4223_s0 + $0xf8] sm:$0xff]  ;;  %v1301_v5 = vld [vmem:[%s4223_s0 + $0xf0] sm:$0xff] }
  0x10   :  { %204 = vst.msk [vmem:[#allocation2 + $0x1e9] sm:$0xff] %vm16_vm1, %v139_v33  ;;  %v2206_v41 = vld [vmem:[#allocation2 + $0x30] sm:$0xff] }
  0x11   :  { %205 = vst.msk [vmem:[#allocation2 + $0x1f9] sm:$0xff] %vm16_vm1, %v140_v35  ;;  %v2209_v42 = vld [vmem:[#allocation2 + $0x38] sm:$0xff] }
  0x12   :  { %1345 = vperm.xlu2 %1987, %v1279_v7   ;;  %206 = vst.msk [vmem:[#allocation2 + $0x201] sm:$0xff] %vm16_vm1, %v141_v38  ;;  %v2211_v43 = vld [vmem:[#allocation2 + $0x48] sm:$0xff] }
  0x13   :  { %1340 = vperm.xlu1 %1986, %v1278_v8   ;;  %1335 = vperm.xlu0 %1985, %v1277_v9   ;;  %207 = vst.msk [vmem:[#allocation2 + $0x211] sm:$0xff] %vm16_vm1, %v142_v39  ;;  %v2213_v44 = vld [vmem:[#allocation2 + $0x50] sm:$0xff]  ;;  %v347_v45 = vadd.f32 %v2211_v43, %v2206_v41 }
  0x14   :  { %208 = vst.msk [vmem:[#allocation2 + $0x219] sm:$0xff] %vm16_vm1, %v143_v40  ;;  %v348_v46 = vadd.f32 %v2213_v44, %v2209_v42  ;;  %v2232_v50 = vld [vmem:[#allocation2 + $0x60] sm:$0xff] }
  0x15   :  { %21 = vst.msk [vmem:[#allocation2 + $0x1b0] sm:$0xff] %vm16_vm1, %v4250_v22  ;;  %v2236_v51 = vld [vmem:[#allocation2 + $0x68] sm:$0xff]  ;;  %v443_v57 = vadd.f32 %v347_v45, %v2232_v50 }
  0x16   :  { %v2238_v52 = vld [vmem:[#allocation2 + $0x1e0] sm:$0xff]  ;;  %22 = vst.msk [vmem:[#allocation2 + $0x1b8] sm:$0xff] %vm16_vm1, %v4250_v22  ;;  %v2252_v58 = vadd.f32 %v348_v46, %v2236_v51 }
  0x17   :  { %v2244_v54 = vld [vmem:[#allocation2 + $0x1e8] sm:$0xff]  ;;  %25 = vst.msk [vmem:[#allocation2 + $0x198] sm:$0xff] %vm16_vm1, %v4250_v22  ;;  %v640_v0 = vrot.slane %v443_v57, 1  ;;  %v929_v6 = vrot.slane %v443_v57, 2 }
  0x18   :  { %v2240_v53 = vld [vmem:[#allocation2 + $0x1f8] sm:$0xff]  ;;  %26 = vst.msk [vmem:[#allocation2 + $0x1a0] sm:$0xff] %vm16_vm1, %v4250_v22  ;;  %v641_v1 = vrot.slane %v2252_v58, 1  ;;  %v930_v7 = vrot.slane %v2252_v58, 2 }
  0x19   :  { %v2246_v55 = vld [vmem:[#allocation2 + $0x200] sm:$0xff]  ;;  %v395_v56 = vadd.f32 %v2240_v53, %v2238_v52  ;;  %28 = vst.msk [vmem:[#allocation2 + $0x348] sm:$0xff] %vm16_vm1, %v4250_v22 }
  0x1a   :  { %1360 = vperm.xlu2 %1987, %v1282_v10   ;;  %v2256_v59 = vld [vmem:[#allocation2 + $0x210] sm:$0xff]  ;;  %v396_v60 = vadd.f32 %v2246_v55, %v2244_v54  ;;  %29 = vst.msk [vmem:[#allocation2 + $0x350] sm:$0xff] %vm16_vm1, %v4250_v22  ;;  %v642_v8 = vsel %vm629_vm2, %v640_v0, %v641_v1 }
  0x1b   :  { %1355 = vperm.xlu1 %1986, %v1281_v11   ;;  %1350 = vperm.xlu0 %1985, %v1280_v12   ;;  %v2262_v61 = vld [vmem:[#allocation2 + $0x218] sm:$0xff]  ;;  %v491_v62 = vadd.f32 %v395_v56, %v2256_v59  ;;  %33 = vst.msk [vmem:[#allocation2 + $0x18] sm:$0x1] %vm31_vm0, %v4250_v22  ;;  %v858_v12 = vadd.f32 %v642_v8, %v443_v57 }
  0x1c   :  { %v2268_v63 = vadd.f32 %v396_v60, %v2262_v61  ;;  %37 = vst.msk [vmem:[#allocation2 + $0x78] sm:$0x1] %vm31_vm0, %v4250_v22 }
  0x1d   :  { %v720_v2 = vrot.slane %v491_v62, 1  ;;  %38 = vst.msk [vmem:[#allocation2 + $0x90] sm:$0x1] %vm31_vm0, %v4250_v22  ;;  %v1009_v10 = vrot.slane %v491_v62, 2 }
  0x1e   :  { %v721_v3 = vrot.slane %v2268_v63, 1  ;;  %39 = vst.msk [vmem:[#allocation2 + $0xa8] sm:$0x1] %vm31_vm0, %v4250_v22  ;;  %v1010_v11 = vrot.slane %v2268_v63, 2 }
  0x1f   :  { %40 = vst.msk [vmem:[#allocation2 + $0xc0] sm:$0x1] %vm31_vm0, %v4250_v22 }
  0x20   :  { %v722_v9 = vsel %vm629_vm2, %v720_v2, %v721_v3  ;;  %41 = vst.msk [vmem:[#allocation2 + $0xd8] sm:$0x1] %vm31_vm0, %v4250_v22 }
  0x21   :  { %42 = vst.msk [vmem:[#allocation2 + $0xf0] sm:$0x1] %vm31_vm0, %v4250_v22 }
  0x22   :  { %1375 = vperm.xlu2 %1987, %v1285_v13   ;;  %v890_v13 = vadd.f32 %v722_v9, %v491_v62  ;;  %43 = vst.msk [vmem:[#allocation2 + $0x108] sm:$0x1] %vm31_vm0, %v4250_v22 }
  0x23   :  { %1370 = vperm.xlu1 %1986, %v1284_v14   ;;  %1365 = vperm.xlu0 %1985, %v1283_v15   ;;  %v931_v14 = vsel %vm918_vm3, %v929_v6, %v930_v7  ;;  %v1011_v15 = vsel %vm918_vm3, %v1009_v10, %v1010_v11  ;;  %44 = vst.msk [vmem:[#allocation2 + $0x120] sm:$0x1] %vm31_vm0, %v4250_v22  ;;  %v112_v10 = vld [vmem:[%s4224_s1 + $0x40] sm:$0xff] }
  0x24   :  { %45 = vst.msk [vmem:[#allocation2 + $0x138] sm:$0x1] %vm31_vm0, %v4250_v22 }
  0x25   :  { %46 = vst.msk [vmem:[#allocation2 + $0x150] sm:$0x1] %vm31_vm0, %v4250_v22 }
  0x26   :  { %47 = vst.msk [vmem:[#allocation2 + $0x168] sm:$0x1] %vm31_vm0, %v4250_v22 }
  0x27   :  { %48 = vst.msk [vmem:[#allocation2 + $0x180] sm:$0x1] %vm31_vm0, %v4250_v22 }
  0x28   :  { %51 = vst.msk [vmem:[#allocation2 + $0x1c8] sm:$0x1] %vm31_vm0, %v4250_v22 }
  0x29   :  { %55 = vst.msk [vmem:[#allocation2 + $0x228] sm:$0x1] %vm31_vm0, %v4250_v22 }
  0x2a   :  { %1390 = vperm.xlu2 %1987, %v1288_v16   ;;  %v1147_v16 = vadd.f32 %v931_v14, %v858_v12  ;;  %56 = vst.msk [vmem:[#allocation2 + $0x240] sm:$0x1] %vm31_vm0, %v4250_v22  ;;  %v115_v14 = vld [vmem:[%s4224_s1 + $0x58] sm:$0xff] }
  0x2b   :  { %1385 = vperm.xlu1 %1986, %v1287_v17   ;;  %1380 = vperm.xlu0 %1985, %v1286_v18   ;;  %v1179_v17 = vadd.f32 %v1011_v15, %v890_v13  ;;  %v1211_v18 = vld [vmem:[%s4225_s2 + $0x20] sm:$0xff]  ;;  %57 = vst.msk [vmem:[#allocation2 + $0x258] sm:$0x1] %vm31_vm0, %v4250_v22  ;;  %v114_v13 = vld [vmem:[%s4224_s1 + $0x50] sm:$0xff] }
  0x2c   :  { %58 = vst.msk [vmem:[#allocation2 + $0x270] sm:$0x1] %vm31_vm0, %v4250_v22 }
  0x2d   :  { %59 = vst.msk [vmem:[#allocation2 + $0x288] sm:$0x1] %vm31_vm0, %v4250_v22 }
  0x2e   :  { %60 = vst.msk [vmem:[#allocation2 + $0x2a0] sm:$0x1] %vm31_vm0, %v4250_v22 }
  0x2f   :  { %61 = vst.msk [vmem:[#allocation2 + $0x2b8] sm:$0x1] %vm31_vm0, %v4250_v22 }
  0x30   :  { %62 = vst.msk [vmem:[#allocation2 + $0x2d0] sm:$0x1] %vm31_vm0, %v4250_v22 }
  0x31   :  { %63 = vst.msk [vmem:[#allocation2 + $0x2e8] sm:$0x1] %vm31_vm0, %v4250_v22 }
  0x32   :  { %1405 = vperm.xlu2 %1987, %v1291_v19   ;;  %v1243_v19 = vld [vmem:[%s4225_s2 + $0x120] sm:$0xff]  ;;  %64 = vst.msk [vmem:[#allocation2 + $0x300] sm:$0x1] %vm31_vm0, %v4250_v22 }
  0x33   :  { %1400 = vperm.xlu1 %1986, %v1290_v20   ;;  %1395 = vperm.xlu0 %1985, %v1289_v21   ;;  %65 = vst.msk [vmem:[#allocation2 + $0x318] sm:$0x1] %vm31_vm0, %v4250_v22 }
  0x34   :  { %66 = vst.msk [vmem:[#allocation2 + $0x330] sm:$0x1] %vm31_vm0, %v4250_v22 }
  0x35   :  { %69 = vst.msk [vmem:[#allocation2 + $0x29] sm:$0x1] %vm31_vm0, %v4250_v22 }
  0x36   :  { %70 = vst.msk [vmem:[#allocation2 + $0x41] sm:$0x1] %vm31_vm0, %v4250_v22 }
  0x37   :  { %71 = vst.msk [vmem:[#allocation2 + $0x59] sm:$0x1] %vm31_vm0, %v4250_v22 }
  0x38   :  { %72 = vst.msk [vmem:[#allocation2 + $0x71] sm:$0x1] %vm31_vm0, %v4250_v22 }
  0x39   :  { %73 = vst.msk [vmem:[#allocation2 + $0x89] sm:$0x1] %vm31_vm0, %v4250_v22 }
  0x3a   :  { %1420 = vperm.xlu2 %1987, %v1294_v23   ;;  %74 = vst.msk [vmem:[#allocation2 + $0xa1] sm:$0x1] %vm31_vm0, %v4250_v22 }
  0x3b   :  { %1415 = vperm.xlu1 %1986, %v1293_v25   ;;  %1410 = vperm.xlu0 %1985, %v1292_v26   ;;  %75 = vst.msk [vmem:[#allocation2 + $0xb9] sm:$0x1] %vm31_vm0, %v4250_v22 }
  0x3c   :  { %76 = vst.msk [vmem:[#allocation2 + $0xd1] sm:$0x1] %vm31_vm0, %v4250_v22 }
  0x3d   :  { %77 = vst.msk [vmem:[#allocation2 + $0xe9] sm:$0x1] %vm31_vm0, %v4250_v22  ;;  %v2388_v32 = vld [vmem:[#allocation2 + $0x40] sm:$0x3] }
  0x3e   :  { %78 = vst.msk [vmem:[#allocation2 + $0x101] sm:$0x1] %vm31_vm0, %v4250_v22  ;;  %v2392_v33 = vld [vmem:[#allocation2 + $0x58] sm:$0x3] }
  0x3f   :  { %79 = vst.msk [vmem:[#allocation2 + $0x119] sm:$0x1] %vm31_vm0, %v4250_v22  ;;  %v349_v35 = vadd.f32 %v2392_v33, %v2388_v32 }
  0x40   :  { %80 = vst.msk [vmem:[#allocation2 + $0x131] sm:$0x1] %vm31_vm0, %v4250_v22 }
  0x41   :  { %81 = vst.msk [vmem:[#allocation2 + $0x149] sm:$0x1] %vm31_vm0, %v4250_v22 }
  0x42   :  { %1435 = vperm.xlu2 %1987, %v1297_v34   ;;  %v2396_v34 = vld [vmem:[#allocation2 + $0x70] sm:$0x3]  ;;  %82 = vst.msk [vmem:[#allocation2 + $0x161] sm:$0x1] %vm31_vm0, %v4250_v22 }
  0x43   :  { %1430 = vperm.xlu1 %1986, %v1296_v36   ;;  %1425 = vperm.xlu0 %1985, %v1295_v37   ;;  %v445_v36 = vadd.f32 %v349_v35, %v2396_v34  ;;  %83 = vst.msk [vmem:[#allocation2 + $0x179] sm:$0x1] %vm31_vm0, %v4250_v22 }
  0x44   :  { %84 = vst.msk [vmem:[#allocation2 + $0x191] sm:$0x1] %vm31_vm0, %v4250_v22 }
  0x45   :  { %v643_v37 = vrot.slane %v445_v36, 1  ;;  %v932_v38 = vrot.slane %v445_v36, 2  ;;  %87 = vst.msk [vmem:[#allocation2 + $0x1d9] sm:$0x1] %vm31_vm0, %v4250_v22 }
  0x46   :  { %88 = vst.msk [vmem:[#allocation2 + $0x1f1] sm:$0x1] %vm31_vm0, %v4250_v22 }
  0x47   :  { %v644_v39 = vsel %vm629_vm2, %v641_v1, %v643_v37  ;;  %v933_v40 = vsel %vm918_vm3, %v930_v7, %v932_v38  ;;  %89 = vst.msk [vmem:[#allocation2 + $0x209] sm:$0x1] %vm31_vm0, %v4250_v22 }
  0x48   :  { %v859_v45 = vadd.f32 %v644_v39, %v2252_v58  ;;  %90 = vst.msk [vmem:[#allocation2 + $0x221] sm:$0x1] %vm31_vm0, %v4250_v22 }
  0x49   :  { %91 = vst.msk [vmem:[#allocation2 + $0x239] sm:$0x1] %vm31_vm0, %v4250_v22 }
  0x4a   :  { %1450 = vperm.xlu2 %1987, %v1300_v47   ;;  %v1148_v46 = vadd.f32 %v933_v40, %v859_v45  ;;  %92 = vst.msk [vmem:[#allocation2 + $0x251] sm:$0x1] %vm31_vm0, %v4250_v22 }
  0x4b   :  { %1445 = vperm.xlu1 %1986, %v1299_v48   ;;  %1440 = vperm.xlu0 %1985, %v1298_v49   ;;  %93 = vst.msk [vmem:[#allocation2 + $0x269] sm:$0x1] %vm31_vm0, %v4250_v22 }
  0x4c   :  { %94 = vst.msk [vmem:[#allocation2 + $0x281] sm:$0x1] %vm31_vm0, %v4250_v22 }
  0x4d   :  { %95 = vst.msk [vmem:[#allocation2 + $0x299] sm:$0x1] %vm31_vm0, %v4250_v22  ;;  %v2439_v57 = vld [vmem:[#allocation2 + $0x1f0] sm:$0x3] }
  0x4e   :  { %96 = vst.msk [vmem:[#allocation2 + $0x2b1] sm:$0x1] %vm31_vm0, %v4250_v22  ;;  %v2443_v58 = vld [vmem:[#allocation2 + $0x208] sm:$0x3] }
  0x4f   :  { %97 = vst.msk [vmem:[#allocation2 + $0x2c9] sm:$0x1] %vm31_vm0, %v4250_v22  ;;  %v2447_v60 = vld [vmem:[#allocation2 + $0x220] sm:$0x3]  ;;  %v397_v62 = vadd.f32 %v2443_v58, %v2439_v57 }
  0x50   :  { %98 = vst.msk [vmem:[#allocation2 + $0x2e1] sm:$0x1] %vm31_vm0, %v4250_v22 }
  0x51   :  { %99 = vst.msk [vmem:[#allocation2 + $0x2f9] sm:$0x1] %vm31_vm0, %v4250_v22  ;;  %v493_v1 = vadd.f32 %v397_v62, %v2447_v60  ;;  %v136_v62 = vld [vmem:[%s4224_s1 + $0x100] sm:$0xff] }
  0x52   :  { %100 = vst.msk [vmem:[#allocation2 + $0x311] sm:$0x1] %vm31_vm0, %v4250_v22 }
  0x53   :  { %1460 = vperm.xlu1 %1986, %v1302_v4   ;;  %1455 = vperm.xlu0 %1985, %v1301_v5   ;;  %101 = vst.msk [vmem:[#allocation2 + $0x329] sm:$0x1] %vm31_vm0, %v4250_v22  ;;  %v723_v4 = vrot.slane %v493_v1, 1  ;;  %v1012_v5 = vrot.slane %v493_v1, 2 }
  0x54   :  { %102 = vst.msk [vmem:[#allocation2 + $0x341] sm:$0x1] %vm31_vm0, %v4250_v22 }
  0x55   :  { %v724_v7 = vsel %vm629_vm2, %v721_v3, %v723_v4  ;;  %v1013_v8 = vsel %vm918_vm3, %v1010_v11, %v1012_v5  ;;  %32 = vst.msk [vmem:[#allocation2] sm:$0x1] %vm31_vm0, %v4250_v22  ;;  %v113_v11 = vld [vmem:[%s4224_s1 + $0x48] sm:$0xff] }
  0x56   :  { %v891_v9 = vadd.f32 %v724_v7, %v2268_v63  ;;  %49 = vst.msk [vmem:[#allocation2 + $0x198] sm:$0x1] %vm31_vm0, %v4250_v22 }
  0x57   :  { %50 = vst.msk [vmem:[#allocation2 + $0x1b0] sm:$0x1] %vm31_vm0, %v4250_v22 }
  0x58   :  { %v1180_v3 = vadd.f32 %v1013_v8, %v891_v9  ;;  %67 = vst.msk [vmem:[#allocation2 + $0x348] sm:$0x1] %vm31_vm0, %v4250_v22  ;;  %v118_v9 = vld [vmem:[%s4224_s1 + $0x70] sm:$0xff] }
  0x59   :  { %177 = vst.msk [vmem:[#allocation2 + $0x79] sm:$0xff] %vm16_vm1, %v112_v10 }
  0x5a   :  { %178 = vst.msk [vmem:[#allocation2 + $0x81] sm:$0xff] %vm16_vm1, %v113_v11  ;;  %v119_v11 = vld [vmem:[%s4224_s1 + $0x78] sm:$0xff] }
  0x5b   :  { %179 = vst.msk [vmem:[#allocation2 + $0x91] sm:$0xff] %vm16_vm1, %v114_v13 }
  0x5c   :  { %v1326_v20 = vpop.permute.xlu2 %1325  ;;  %180 = vst.msk [vmem:[#allocation2 + $0x99] sm:$0xff] %vm16_vm1, %v115_v14 }
  0x5d   :  { %v1467_v21 = vmul.f32 %v1326_v20, %v1147_v16  ;;  %v1499_v23 = vmul.f32 %v1326_v20, %v1179_v17  ;;  %v144_v16 = vld [vmem:[%s4224_s1 + $0x140] sm:$0xff]  ;;  %201 = vst.msk [vmem:[#allocation2 + $0x1c9] sm:$0xff] %vm16_vm1, %v136_v62 }
  0x5e   :  { %209 = vst.msk [vmem:[#allocation2 + $0x229] sm:$0xff] %vm16_vm1, %v144_v16  ;;  %v121_v16 = vld [vmem:[%s4224_s1 + $0x88] sm:$0xff] }
  0x5f   :  { %v1531_v24 = vadd.f32 %v1467_v21, %v1211_v18  ;;  %v1563_v25 = vadd.f32 %v1499_v23, %v1243_v19  ;;  %v145_v19 = vld [vmem:[%s4224_s1 + $0x148] sm:$0xff]  ;;  %v146_v21 = vld [vmem:[%s4224_s1 + $0x150] sm:$0xff]  ;;  %v147_v23 = vld [vmem:[%s4224_s1 + $0x158] sm:$0xff]  ;;  %183 = vst.msk [vmem:[#allocation2 + $0xc1] sm:$0xff] %vm16_vm1, %v118_v9 }
  0x60   :  { %210 = vst.msk [vmem:[#allocation2 + $0x231] sm:$0xff] %vm16_vm1, %v145_v19 }
  0x61   :  { %vm1595_vm4 = vcmp.gt.f32.partialorder %v1531_v24, 0.3  ;;  %vm1627_vm5 = vcmp.gt.f32.partialorder %v1563_v25, 0.3  ;;  %v1787_v26 = vmul.f32 0.2, %v1531_v24 }
  0x62   :  { %v1659_v27 = vsel %vm1595_vm4, 1.0, %v4250_v22  ;;  %v1691_v28 = vsel %vm1627_vm5, 1.0, %v4250_v22  ;;  %v1819_v29 = vmul.f32 0.2, %v1563_v25  ;;  %v2528_v24 = vld [vmem:[#allocation2 + $0x78] sm:$0xff]  ;;  %v116_v25 = vld [vmem:[%s4224_s1 + $0x60] sm:$0xff] }
  0x63   :  { %1723 = vst.msk [vmem:[%s4226_s3 + $0x20] sm:$0xff] %vm16_vm1, %v1659_v27  ;;  %v1851_v30 = vsel %vm1595_vm4, 0.0, %v1787_v26  ;;  %v2534_v26 = vld [vmem:[#allocation2 + $0x80] sm:$0xff]  ;;  %v353_v27 = vadd.f32 %v2528_v24, %v2232_v50  ;;  %v252_v35 = vld [vmem:[#allocation2 + $0x98] sm:$0xff]  ;;  %v149_v50 = vld [vmem:[%s4224_s1 + $0x168] sm:$0xff] }
  0x64   :  { %1755 = vst.msk [vmem:[%s4226_s3 + $0x120] sm:$0xff] %vm16_vm1, %v1691_v28  ;;  %v1883_v31 = vsel %vm1627_vm5, 0.0, %v1819_v29  ;;  %v1331_v48 = vpop.permute.xlu2 %1330  ;;  %v117_v28 = vld [vmem:[%s4224_s1 + $0x68] sm:$0xff]  ;;  %v251_v29 = vld [vmem:[#allocation2 + $0x90] sm:$0xff]  ;;  %v357_v1 = vadd.f32 %v252_v35, %v2534_v26 }
  0x65   :  { %1915 = vst.msk [vmem:[%s4227_s4 + $0x20] sm:$0xff] %vm16_vm1, %v1851_v30  ;;  %v1468_v49 = vmul.f32 %v1331_v48, %v1148_v46  ;;  %v1500_v12 = vmul.f32 %v1331_v48, %v1180_v3  ;;  %v354_v30 = vadd.f32 %v2534_v26, %v2236_v51  ;;  %v449_v36 = vadd.f32 %v353_v27, %v251_v29  ;;  %v2551_v37 = vld [vmem:[#allocation2 + $0x228] sm:$0xff]  ;;  %v104_v51 = vld [vmem:[%s4224_s1] sm:$0xff] }
  0x66   :  { %1947 = vst.msk [vmem:[%s4227_s4 + $0x120] sm:$0xff] %vm16_vm1, %v1883_v31  ;;  %v148_v31 = vld [vmem:[%s4224_s1 + $0x160] sm:$0xff]  ;;  %v2556_v39 = vld [vmem:[#allocation2 + $0x88] sm:$0x3]  ;;  %v401_v40 = vadd.f32 %v2551_v37, %v2256_v59 }
  0x67   :  { %211 = vst.msk [vmem:[#allocation2 + $0x241] sm:$0xff] %vm16_vm1, %v146_v21  ;;  %v2553_v38 = vadd.f32 %v354_v30, %v252_v35  ;;  %v650_v45 = vrot.slane %v449_v36, 1  ;;  %v939_v46 = vrot.slane %v449_v36, 2  ;;  %v105_v48 = vld [vmem:[%s4224_s1 + $0x8] sm:$0xff]  ;;  %v2573_v59 = vld [vmem:[#allocation2 + $0x230] sm:$0xff] }
  0x68   :  { %212 = vst.msk [vmem:[#allocation2 + $0x249] sm:$0xff] %vm16_vm1, %v147_v23  ;;  %v402_v5 = vadd.f32 %v2573_v59, %v2262_v61 }
  0x69   :  { %181 = vst.msk [vmem:[#allocation2 + $0xa9] sm:$0xff] %vm16_vm1, %v116_v25 }
  0x6a   :  { %182 = vst.msk [vmem:[#allocation2 + $0xb1] sm:$0xff] %vm16_vm1, %v117_v28 }
  0x6b   :  { %213 = vst.msk [vmem:[#allocation2 + $0x259] sm:$0xff] %vm16_vm1, %v148_v31  ;;  %v150_v31 = vld [vmem:[%s4224_s1 + $0x170] sm:$0xff] }
  0x6c   :  { %214 = vst.msk [vmem:[#allocation2 + $0x261] sm:$0xff] %vm16_vm1, %v149_v50 }
  0x6d   :  { %v1212_v47 = vld [vmem:[%s4225_s2 + $0x28] sm:$0xff]  ;;  %169 = vst.msk [vmem:[#allocation2 + $0x19] sm:$0xff] %vm16_vm1, %v104_v51  ;;  %v151_v51 = vld [vmem:[%s4224_s1 + $0x178] sm:$0xff] }
  0x6e   :  { %v1532_v56 = vadd.f32 %v1468_v49, %v1212_v47  ;;  %v253_v47 = vld [vmem:[#allocation2 + $0xa0] sm:$0x3]  ;;  %v4231_v49 = vrot.slane %v2553_v38, 1  ;;  %170 = vst.msk [vmem:[#allocation2 + $0x21] sm:$0xff] %vm16_vm1, %v105_v48 }
  0x6f   :  { %v305_v4 = vld [vmem:[#allocation2 + $0x240] sm:$0xff]  ;;  %v358_v8 = vadd.f32 %v253_v47, %v2556_v39  ;;  %v306_v3 = vld [vmem:[#allocation2 + $0x248] sm:$0xff]  ;;  %v307_v61 = vld [vmem:[#allocation2 + $0x250] sm:$0x3]  ;;  %184 = vst.msk [vmem:[#allocation2 + $0xc9] sm:$0xff] %vm16_vm1, %v119_v11 }
  0x70   :  { %vm1596_vm6 = vcmp.gt.f32.partialorder %v1532_v56, 0.3  ;;  %v1788_v0 = vmul.f32 0.2, %v1532_v56  ;;  %v4229_v56 = vrot.slane %v2553_v38, 2  ;;  %v497_v10 = vadd.f32 %v401_v40, %v305_v4  ;;  %v152_v48 = vld [vmem:[%s4224_s1 + $0x180] sm:$0xff] }
  0x71   :  { %v1660_v2 = vsel %vm1596_vm6, 1.0, %v4250_v22  ;;  %v405_v13 = vadd.f32 %v306_v3, %v2573_v59  ;;  %v2610_v21 = vld [vmem:[#allocation2 + $0xb0] sm:$0xff]  ;;  %v256_v23 = vld [vmem:[#allocation2 + $0xb8] sm:$0x3]  ;;  %186 = vst.msk [vmem:[#allocation2 + $0xe1] sm:$0xff] %vm16_vm1, %v121_v16 }
  0x72   :  { %v1852_v6 = vsel %vm1596_vm6, 0.0, %v1788_v0  ;;  %1724 = vst.msk [vmem:[%s4226_s3 + $0x28] sm:$0xff] %vm16_vm1, %v1660_v2  ;;  %v2575_v0 = vld [vmem:[#allocation2 + $0x238] sm:$0x3]  ;;  %v137_v2 = vld [vmem:[%s4224_s1 + $0x108] sm:$0xff]  ;;  %v941_v7 = vsel %vm918_vm3, %v939_v46, %v4229_v56  ;;  %v2619_v29 = vadd.f32 %v357_v1, %v2610_v21  ;;  %v454_v30 = vadd.f32 %v358_v8, %v256_v23  ;;  %v233_v23 = vld [vmem:[#allocation2] sm:$0xff] }
  0x73   :  { %1916 = vst.msk [vmem:[%s4227_s4 + $0x28] sm:$0xff] %vm16_vm1, %v1852_v6  ;;  %v652_v6 = vsel %vm629_vm2, %v650_v45, %v4231_v49  ;;  %v406_v14 = vadd.f32 %v307_v61, %v2575_v0  ;;  %v310_v50 = vld [vmem:[#allocation2 + $0x268] sm:$0x3] }
  0x74   :  { %202 = vst.msk [vmem:[#allocation2 + $0x1d1] sm:$0xff] %vm16_vm1, %v137_v2  ;;  %v656_v2 = vrot.slane %v2619_v29, 1  ;;  %v658_v4 = vrot.slane %v454_v30, 1  ;;  %v945_v9 = vrot.slane %v2619_v29, 2 }
  0x75   :  { %v502_v47 = vadd.f32 %v406_v14, %v310_v50  ;;  %215 = vst.msk [vmem:[#allocation2 + $0x271] sm:$0xff] %vm16_vm1, %v150_v31 }
  0x76   :  { %216 = vst.msk [vmem:[#allocation2 + $0x279] sm:$0xff] %vm16_vm1, %v151_v51  ;;  %v659_v11 = vsel %vm629_vm2, %v656_v2, %v658_v4 }
  0x77   :  { %v738_v8 = vrot.slane %v502_v47, 1  ;;  %217 = vst.msk [vmem:[#allocation2 + $0x289] sm:$0xff] %vm16_vm1, %v152_v48  ;;  %v865_v16 = vadd.f32 %v659_v11, %v2619_v29  ;;  %v1027_v50 = vrot.slane %v502_v47, 2  ;;  %v234_v11 = vld [vmem:[#allocation2 + $0x8] sm:$0xff] }
  0x78   :  { %20 = vst.msk [vmem:[#allocation2 + $0x10] sm:$0x3] %vm19_vm8, %v4250_v22 }
  0x79   :  { %23 = vst.msk [vmem:[#allocation2 + $0x1c0] sm:$0x3] %vm19_vm8, %v4250_v22 }
  0x7a   :  { %v1244_v63 = vld [vmem:[%s4225_s2 + $0x128] sm:$0xff]  ;;  %68 = vst.msk [vmem:[#allocation2 + $0x11] sm:$0x1] %vm31_vm0, %v4250_v22 }
  0x7b   :  { %v1564_v15 = vadd.f32 %v1500_v12, %v1244_v63  ;;  %v862_v63 = vadd.f32 %v652_v6, %v449_v36  ;;  %v2599_v12 = vadd.f32 %v402_v5, %v306_v3  ;;  %v2625_v36 = vld [vmem:[#allocation2 + $0x260] sm:$0xff]  ;;  %v153_v5 = vld [vmem:[%s4224_s1 + $0x188] sm:$0xff]  ;;  %v947_v3 = vrot.slane %v454_v30, 2  ;;  %86 = vst.msk [vmem:[#allocation2 + $0x1c1] sm:$0x1] %vm31_vm0, %v4250_v22 }
  0x7c   :  { %v2638_v46 = vadd.f32 %v405_v13, %v2625_v36  ;;  %v237_v13 = vld [vmem:[#allocation2 + $0x20] sm:$0xff]  ;;  %218 = vst.msk [vmem:[#allocation2 + $0x291] sm:$0xff] %vm16_vm1, %v153_v5 }
  0x7d   :  { %vm1628_vm7 = vcmp.gt.f32.partialorder %v1564_v15, 0.3  ;;  %v1820_v17 = vmul.f32 0.2, %v1564_v15  ;;  %v120_v15 = vld [vmem:[%s4224_s1 + $0x80] sm:$0xff]  ;;  %v1151_v19 = vadd.f32 %v941_v7, %v862_v63  ;;  %v4230_v25 = vrot.slane %v2599_v12, 1 }
  0x7e   :  { %v1692_v18 = vsel %vm1628_vm7, 1.0, %v4250_v22  ;;  %v4228_v27 = vrot.slane %v2599_v12, 2  ;;  %185 = vst.msk [vmem:[#allocation2 + $0xd9] sm:$0xff] %vm16_vm1, %v120_v15  ;;  %v736_v7 = vrot.slane %v2638_v46, 1 }
  0x7f   :  { %1756 = vst.msk [vmem:[%s4226_s3 + $0x128] sm:$0xff] %vm16_vm1, %v1692_v18  ;;  %v1884_v20 = vsel %vm1628_vm7, 0.0, %v1820_v17  ;;  %v730_v17 = vrot.slane %v497_v10, 1  ;;  %v1019_v18 = vrot.slane %v497_v10, 2 }
  0x80   :  { %1948 = vst.msk [vmem:[%s4227_s4 + $0x128] sm:$0xff] %vm16_vm1, %v1884_v20  ;;  %v1346_v20 = vpop.permute.xlu2 %1345  ;;  %v739_v15 = vsel %vm629_vm2, %v736_v7, %v738_v8 }
  0x81   :  { %v1471_v35 = vmul.f32 %v1346_v20, %v1151_v19  ;;  %v732_v40 = vsel %vm629_vm2, %v730_v17, %v4230_v25  ;;  %v1021_v45 = vsel %vm918_vm3, %v1019_v18, %v4228_v27  ;;  %v948_v17 = vsel %vm918_vm3, %v945_v9, %v947_v3  ;;  %v2667_v18 = vld [vmem:[#allocation2 + $0x1c8] sm:$0xff]  ;;  %v2669_v19 = vld [vmem:[#allocation2 + $0x1d0] sm:$0xff]  ;;  %27 = vst.msk [vmem:[#allocation2 + $0x1a8] sm:$0x3] %vm19_vm8, %v4250_v22 }
  0x82   :  { %v894_v62 = vadd.f32 %v732_v40, %v497_v10  ;;  %v236_v10 = vld [vmem:[#allocation2 + $0x18] sm:$0xff]  ;;  %v897_v31 = vadd.f32 %v739_v15, %v2638_v46  ;;  %v1154_v51 = vadd.f32 %v948_v17, %v865_v16  ;;  %v393_v4 = vadd.f32 %v2244_v54, %v2669_v19  ;;  %30 = vst.msk [vmem:[#allocation2 + $0x358] sm:$0x3] %vm19_vm8, %v4250_v22  ;;  %v235_v25 = vld [vmem:[#allocation2 + $0x10] sm:$0x3] }
  0x83   :  { %v344_v40 = vadd.f32 %v2206_v41, %v236_v10  ;;  %v341_v5 = vadd.f32 %v236_v10, %v233_v23  ;;  %v2824_v56 = vld [vmem:[#allocation2 + $0x290] sm:$0xff]  ;;  %85 = vst.msk [vmem:[#allocation2 + $0x1a9] sm:$0x1] %vm31_vm0, %v4250_v22  ;;  %v289_v49 = vld [vmem:[#allocation2 + $0x1c0] sm:$0x3] }
  0x84   :  { %v1183_v63 = vadd.f32 %v1021_v45, %v894_v62  ;;  %103 = vst.msk [vmem:[#allocation2 + $0x359] sm:$0x1] %vm31_vm0, %v4250_v22 }
  0x85   :  { %v440_v8 = vadd.f32 %v344_v40, %v2211_v43  ;;  %v2708_v43 = vadd.f32 %v393_v4, %v2246_v55  ;;  %v288_v4 = vld [vmem:[#allocation2 + $0x1b8] sm:$0xff] }
  0x87   :  { %v1215_v28 = vld [vmem:[%s4225_s2 + $0x40] sm:$0xff] }
  0x88   :  { %v1535_v1 = vadd.f32 %v1471_v35, %v1215_v28  ;;  %v1247_v6 = vld [vmem:[%s4225_s2 + $0x140] sm:$0xff]  ;;  %v1503_v28 = vmul.f32 %v1346_v20, %v1183_v63  ;;  %v4232_v35 = vrot.slane %v2638_v46, 2  ;;  %v345_v20 = vadd.f32 %v2209_v42, %v237_v13  ;;  %v1361_v62 = vpop.permute.xlu2 %1360 }
  0x8a   :  { %vm1599_vm9 = vcmp.gt.f32.partialorder %v1535_v1, 0.3  ;;  %v1791_v61 = vmul.f32 0.2, %v1535_v1  ;;  %v1567_v45 = vadd.f32 %v1503_v28, %v1247_v6  ;;  %v392_v1 = vadd.f32 %v2238_v52, %v2667_v18 }
  0x8b   :  { %v1663_v14 = vsel %vm1599_vm9, 1.0, %v4250_v22  ;;  %v1028_v47 = vsel %vm918_vm3, %v4232_v35, %v1027_v50  ;;  %v1474_v6 = vmul.f32 %v1361_v62, %v1154_v51  ;;  %v2698_v3 = vadd.f32 %v345_v20, %v2213_v44 }
  0x8c   :  { %1727 = vst.msk [vmem:[%s4226_s3 + $0x40] sm:$0xff] %vm16_vm1, %v1663_v14  ;;  %v1855_v30 = vsel %vm1599_vm9, 0.0, %v1791_v61  ;;  %vm1631_vm10 = vcmp.gt.f32.partialorder %v1567_v45, 0.3  ;;  %v1823_v63 = vmul.f32 0.2, %v1567_v45  ;;  %v1186_v61 = vadd.f32 %v1028_v47, %v897_v31 }
  0x8d   :  { %1919 = vst.msk [vmem:[%s4227_s4 + $0x40] sm:$0xff] %vm16_vm1, %v1855_v30  ;;  %v488_v10 = vadd.f32 %v392_v1, %v2240_v53  ;;  %v1695_v14 = vsel %vm1631_vm10, 1.0, %v4250_v22  ;;  %v635_v44 = vrot.slane %v440_v8, 1  ;;  %v636_v23 = vrot.slane %v2698_v3, 1  ;;  %v287_v45 = vld [vmem:[#allocation2 + $0x1b0] sm:$0xff]  ;;  %v2736_v47 = vld [vmem:[#allocation2 + $0xa8] sm:$0xff] }
  0x8e   :  { %1759 = vst.msk [vmem:[%s4226_s3 + $0x140] sm:$0xff] %vm16_vm1, %v1695_v14  ;;  %v1887_v53 = vsel %vm1631_vm10, 0.0, %v1823_v63  ;;  %v1506_v17 = vmul.f32 %v1361_v62, %v1186_v61  ;;  %v716_v30 = vrot.slane %v2708_v43, 1  ;;  %v342_v31 = vadd.f32 %v237_v13, %v234_v11 }
  0x8f   :  { %v715_v28 = vrot.slane %v488_v10, 1  ;;  %v637_v40 = vsel %vm629_vm2, %v635_v44, %v636_v23  ;;  %v924_v20 = vrot.slane %v440_v8, 2  ;;  %v925_v1 = vrot.slane %v2698_v3, 2 }
  0x90   :  { %v856_v62 = vadd.f32 %v637_v40, %v440_v8  ;;  %v1004_v11 = vrot.slane %v488_v10, 2  ;;  %v389_v44 = vadd.f32 %v2667_v18, %v287_v45 }
  0x91   :  { %v717_v13 = vsel %vm629_vm2, %v715_v28, %v716_v30  ;;  %v926_v8 = vsel %vm918_vm3, %v924_v20, %v925_v1  ;;  %v437_v28 = vadd.f32 %v341_v5, %v2206_v41  ;;  %v122_v5 = vld [vmem:[%s4224_s1 + $0x90] sm:$0xff] }
  0x92   :  { %v888_v61 = vadd.f32 %v717_v13, %v488_v10  ;;  %187 = vst.msk [vmem:[#allocation2 + $0xf1] sm:$0xff] %vm16_vm1, %v122_v5 }
  0x93   :  { %v630_v45 = vrot.slane %v437_v28, 1 }
  0x94   :  { %v1218_v48 = vld [vmem:[%s4225_s2 + $0x58] sm:$0xff] }
  0x95   :  { %v1250_v15 = vld [vmem:[%s4225_s2 + $0x158] sm:$0xff]  ;;  %v1538_v16 = vadd.f32 %v1474_v6, %v1218_v48  ;;  %v257_v6 = vld [vmem:[#allocation2 + $0xc0] sm:$0xff] }
  0x96   :  { %1951 = vst.msk [vmem:[%s4227_s4 + $0x140] sm:$0xff] %vm16_vm1, %v1887_v53  ;;  %v1570_v50 = vadd.f32 %v1506_v17, %v1250_v15  ;;  %v1005_v15 = vrot.slane %v2708_v43, 2  ;;  %v1145_v53 = vadd.f32 %v926_v8, %v856_v62  ;;  %v390_v17 = vadd.f32 %v2669_v19, %v288_v4  ;;  %v154_v4 = vld [vmem:[%s4224_s1 + $0x190] sm:$0xff] }
  0x97   :  { %vm1602_vm11 = vcmp.gt.f32.partialorder %v1538_v16, 0.3  ;;  %v1794_v55 = vmul.f32 0.2, %v1538_v16  ;;  %v1316_v16 = vpop.permute.xlu1 %1315  ;;  %v485_v19 = vadd.f32 %v389_v44, %v2238_v52  ;;  %v362_v41 = vadd.f32 %v257_v6, %v2736_v47  ;;  %219 = vst.msk [vmem:[#allocation2 + $0x2a1] sm:$0xff] %vm16_vm1, %v154_v4 }
  0x98   :  { %v1666_v51 = vsel %vm1602_vm11, 1.0, %v4250_v22  ;;  %vm1634_vm12 = vcmp.gt.f32.partialorder %v1570_v50, 0.3  ;;  %v1826_v63 = vmul.f32 0.2, %v1570_v50  ;;  %v1006_v18 = vsel %vm918_vm3, %v1004_v11, %v1005_v15 }
  0x99   :  { %1730 = vst.msk [vmem:[%s4226_s3 + $0x58] sm:$0xff] %vm16_vm1, %v1666_v51  ;;  %v1858_v48 = vsel %vm1602_vm11, 0.0, %v1794_v55  ;;  %v1698_v14 = vsel %vm1634_vm12, 1.0, %v4250_v22  ;;  %v2767_v50 = vadd.f32 %v342_v31, %v2209_v42  ;;  %v1177_v51 = vadd.f32 %v1006_v18, %v888_v61  ;;  %v123_v42 = vld [vmem:[%s4224_s1 + $0x98] sm:$0xff] }
  0x9a   :  { %1922 = vst.msk [vmem:[%s4227_s4 + $0x58] sm:$0xff] %vm16_vm1, %v1858_v48  ;;  %v1890_v10 = vsel %vm1634_vm12, 0.0, %v1826_v63  ;;  %v1465_v40 = vmul.f32 %v1316_v16, %v1145_v53  ;;  %v2775_v20 = vadd.f32 %v390_v17, %v2244_v54  ;;  %v2777_v48 = vld [vmem:[#allocation2 + $0xc8] sm:$0xff]  ;;  %v710_v13 = vrot.slane %v485_v19, 1  ;;  %v2804_v53 = vld [vmem:[#allocation2 + $0x258] sm:$0xff]  ;;  %v311_v17 = vld [vmem:[#allocation2 + $0x270] sm:$0xff] }
  0x9b   :  { %1762 = vst.msk [vmem:[%s4226_s3 + $0x158] sm:$0xff] %vm16_vm1, %v1698_v14  ;;  %v631_v31 = vrot.slane %v2767_v50, 1  ;;  %v919_v62 = vrot.slane %v437_v28, 2  ;;  %v920_v54 = vrot.slane %v2767_v50, 2  ;;  %v1497_v6 = vmul.f32 %v1316_v16, %v1177_v51  ;;  %v155_v14 = vld [vmem:[%s4224_s1 + $0x198] sm:$0xff] }
  0x9c   :  { %1954 = vst.msk [vmem:[%s4227_s4 + $0x158] sm:$0xff] %vm16_vm1, %v1890_v10  ;;  %v711_v61 = vrot.slane %v2775_v20, 1  ;;  %v999_v11 = vrot.slane %v485_v19, 2  ;;  %v1000_v16 = vrot.slane %v2775_v20, 2  ;;  %v260_v10 = vld [vmem:[#allocation2 + $0xd8] sm:$0xff]  ;;  %v363_v18 = vadd.f32 %v2777_v48, %v2610_v21 }
  0x9d   :  { %v632_v8 = vsel %vm629_vm2, %v630_v45, %v631_v31  ;;  %v921_v44 = vsel %vm918_vm3, %v919_v62, %v920_v54  ;;  %188 = vst.msk [vmem:[#allocation2 + $0xf9] sm:$0xff] %vm16_vm1, %v123_v42  ;;  %v2814_v45 = vld [vmem:[#allocation2 + $0x28] sm:$0x3]  ;;  %v410_v4 = vadd.f32 %v311_v17, %v2804_v53 }
  0x9e   :  { %v712_v51 = vsel %vm629_vm2, %v710_v13, %v711_v61  ;;  %v854_v27 = vadd.f32 %v632_v8, %v437_v28  ;;  %v1001_v42 = vsel %vm918_vm3, %v999_v11, %v1000_v16  ;;  %220 = vst.msk [vmem:[#allocation2 + $0x2a9] sm:$0xff] %vm16_vm1, %v155_v14 }
  0x9f   :  { %v886_v21 = vadd.f32 %v712_v51, %v485_v19  ;;  %v1306_v19 = vpop.permute.xlu0 %1305 }
  0xa0   :  { %v1143_v14 = vadd.f32 %v921_v44, %v854_v27 }
  0xa1   :  { %v1175_v8 = vadd.f32 %v1001_v42, %v886_v21  ;;  %v292_v42 = vld [vmem:[#allocation2 + $0x1d8] sm:$0x3] }
  0xa3   :  { %v1209_v55 = vld [vmem:[%s4225_s2 + $0x10] sm:$0xff] }
  0xa4   :  { %v1241_v52 = vld [vmem:[%s4225_s2 + $0x110] sm:$0xff]  ;;  %v1529_v63 = vadd.f32 %v1465_v40, %v1209_v55  ;;  %v2812_v40 = vld [vmem:[#allocation2 + $0x278] sm:$0xff] }
  0xa5   :  { %v1561_v55 = vadd.f32 %v1497_v6, %v1241_v52  ;;  %v2822_v52 = vld [vmem:[#allocation2 + $0xe0] sm:$0xff]  ;;  %v314_v6 = vld [vmem:[#allocation2 + $0x288] sm:$0xff]  ;;  %v411_v51 = vadd.f32 %v2812_v40, %v2625_v36  ;;  %v1463_v36 = vmul.f32 %v1306_v19, %v1143_v14 }
  0xa6   :  { %vm1593_vm13 = vcmp.gt.f32.partialorder %v1529_v63, 0.3  ;;  %v1785_v5 = vmul.f32 0.2, %v1529_v63  ;;  %v2851_v27 = vadd.f32 %v363_v18, %v2822_v52  ;;  %v506_v44 = vadd.f32 %v410_v4, %v314_v6 }
  0xa7   :  { %v1657_v62 = vsel %vm1593_vm13, 1.0, %v4250_v22  ;;  %vm1625_vm14 = vcmp.gt.f32.partialorder %v1561_v55, 0.3  ;;  %v1817_v13 = vmul.f32 0.2, %v1561_v55  ;;  %v2858_v21 = vadd.f32 %v411_v51, %v2824_v56 }
  0xa8   :  { %1721 = vst.msk [vmem:[%s4226_s3 + $0x10] sm:$0xff] %vm16_vm1, %v1657_v62  ;;  %v1849_v28 = vsel %vm1593_vm13, 0.0, %v1785_v5  ;;  %v1689_v11 = vsel %vm1625_vm14, 1.0, %v4250_v22  ;;  %v458_v5 = vadd.f32 %v362_v41, %v260_v10  ;;  %v1495_v62 = vmul.f32 %v1306_v19, %v1175_v8 }
  0xa9   :  { %1913 = vst.msk [vmem:[%s4227_s4 + $0x10] sm:$0xff] %vm16_vm1, %v1849_v28  ;;  %v1881_v63 = vsel %vm1625_vm14, 0.0, %v1817_v13  ;;  %v346_v13 = vadd.f32 %v2388_v32, %v2814_v45  ;;  %v4233_v41 = vrot.slane %v2851_v27, 1  ;;  %v745_v10 = vrot.slane %v506_v44, 1 }
  0xaa   :  { %1753 = vst.msk [vmem:[%s4226_s3 + $0x110] sm:$0xff] %vm16_vm1, %v1689_v11  ;;  %v665_v28 = vrot.slane %v458_v5, 1  ;;  %v954_v18 = vrot.slane %v458_v5, 2  ;;  %v4234_v11 = vrot.slane %v2858_v21, 1  ;;  %v1034_v14 = vrot.slane %v506_v44, 2 }
  0xab   :  { %v4243_v8 = vrot.slane %v2858_v21, 2  ;;  %v394_v51 = vadd.f32 %v2439_v57, %v292_v42 }
  0xac   :  { %v667_v19 = vsel %vm629_vm2, %v665_v28, %v4233_v41 }
  0xad   :  { %v868_v28 = vadd.f32 %v667_v19, %v458_v5 }
  0xb0   :  { %v1207_v17 = vld [vmem:[%s4225_s2] sm:$0xff] }
  0xb1   :  { %v1239_v55 = vld [vmem:[%s4225_s2 + $0x100] sm:$0xff]  ;;  %v1527_v6 = vadd.f32 %v1463_v36, %v1207_v17 }
  0xb2   :  { %1945 = vst.msk [vmem:[%s4227_s4 + $0x110] sm:$0xff] %vm16_vm1, %v1881_v63  ;;  %v1559_v4 = vadd.f32 %v1495_v62, %v1239_v55  ;;  %v4244_v63 = vrot.slane %v2851_v27, 2  ;;  %v747_v55 = vsel %vm629_vm2, %v745_v10, %v4234_v11  ;;  %v1036_v11 = vsel %vm918_vm3, %v1034_v14, %v4243_v8 }
  0xb3   :  { %vm1591_vm15 = vcmp.gt.f32.partialorder %v1527_v6, 0.3  ;;  %v1783_v17 = vmul.f32 0.2, %v1527_v6  ;;  %v900_v6 = vadd.f32 %v747_v55, %v506_v44  ;;  %v490_v44 = vadd.f32 %v394_v51, %v2443_v58  ;;  %v125_v51 = vld [vmem:[%s4224_s1 + $0xa8] sm:$0xff] }
  0xb4   :  { %vm1623_vm4 = vcmp.gt.f32.partialorder %v1559_v4, 0.3  ;;  %v1655_v36 = vsel %vm1591_vm15, 1.0, %v4250_v22  ;;  %v1815_v35 = vmul.f32 0.2, %v1559_v4  ;;  %v956_v10 = vsel %vm918_vm3, %v954_v18, %v4244_v63  ;;  %v1376_v4 = vpop.permute.xlu2 %1375  ;;  %v124_v18 = vld [vmem:[%s4224_s1 + $0xa0] sm:$0xff] }
  0xb5   :  { %v1687_v62 = vsel %vm1623_vm4, 1.0, %v4250_v22  ;;  %1719 = vst.msk [vmem:[%s4226_s3] sm:$0xff] %vm16_vm1, %v1655_v36  ;;  %v1847_v41 = vsel %vm1591_vm15, 0.0, %v1783_v17  ;;  %v1157_v19 = vadd.f32 %v956_v10, %v868_v28  ;;  %v442_v36 = vadd.f32 %v346_v13, %v2392_v33 }
  0xb6   :  { %1751 = vst.msk [vmem:[%s4226_s3 + $0x100] sm:$0xff] %vm16_vm1, %v1687_v62  ;;  %v1879_v5 = vsel %vm1623_vm4, 0.0, %v1815_v35  ;;  %v1189_v14 = vadd.f32 %v1036_v11, %v900_v6  ;;  %v343_v35 = vadd.f32 %v2814_v45, %v235_v25  ;;  %v391_v55 = vadd.f32 %v292_v42, %v289_v49 }
  0xb7   :  { %1911 = vst.msk [vmem:[%s4227_s4] sm:$0xff] %vm16_vm1, %v1847_v41  ;;  %v2908_v13 = vadd.f32 %v2822_v52, %v2777_v48  ;;  %v1477_v11 = vmul.f32 %v1376_v4, %v1157_v19  ;;  %v638_v25 = vrot.slane %v442_v36, 1  ;;  %v718_v49 = vrot.slane %v490_v44, 1  ;;  %v126_v52 = vld [vmem:[%s4224_s1 + $0xb0] sm:$0xff] }
  0xb8   :  { %v927_v45 = vrot.slane %v442_v36, 2  ;;  %v1509_v42 = vmul.f32 %v1376_v4, %v1189_v14  ;;  %v1007_v62 = vrot.slane %v490_v44, 2  ;;  %v439_v28 = vadd.f32 %v343_v35, %v2388_v32  ;;  %189 = vst.msk [vmem:[#allocation2 + $0x109] sm:$0xff] %vm16_vm1, %v124_v18  ;;  %v127_v32 = vld [vmem:[%s4224_s1 + $0xb8] sm:$0xff]  ;;  %v262_v35 = vld [vmem:[#allocation2 + $0xe8] sm:$0x3] }
  0xb9   :  { %v487_v6 = vadd.f32 %v391_v55, %v2439_v57  ;;  %v719_v19 = vsel %vm629_vm2, %v716_v30, %v718_v49  ;;  %190 = vst.msk [vmem:[#allocation2 + $0x111] sm:$0xff] %vm16_vm1, %v125_v51  ;;  %v2947_v55 = vld [vmem:[#allocation2 + $0x280] sm:$0x3] }
  0xba   :  { %v928_v4 = vsel %vm918_vm3, %v925_v1, %v927_v45  ;;  %v889_v44 = vadd.f32 %v719_v19, %v2708_v43  ;;  %191 = vst.msk [vmem:[#allocation2 + $0x121] sm:$0xff] %vm16_vm1, %v126_v52  ;;  %v1321_v1 = vpop.permute.xlu1 %1320  ;;  %v633_v18 = vrot.slane %v439_v28, 1  ;;  %v316_v45 = vld [vmem:[#allocation2 + $0x298] sm:$0x3] }
  0xbb   :  { %v713_v14 = vrot.slane %v487_v6, 1  ;;  %192 = vst.msk [vmem:[#allocation2 + $0x129] sm:$0xff] %vm16_vm1, %v127_v32  ;;  %v2973_v19 = vld [vmem:[#allocation2 + $0xf8] sm:$0xff] }
  0xbc   :  { %v634_v49 = vsel %vm629_vm2, %v631_v31, %v633_v18  ;;  %v156_v31 = vld [vmem:[%s4224_s1 + $0x1a0] sm:$0xff]  ;;  %v415_v18 = vadd.f32 %v316_v45, %v2947_v55 }
  0xbd   :  { %221 = vst.msk [vmem:[#allocation2 + $0x2b9] sm:$0xff] %vm16_vm1, %v156_v31 }
  0xbe   :  { %v1221_v17 = vld [vmem:[%s4225_s2 + $0x70] sm:$0xff] }
  0xbf   :  { %1943 = vst.msk [vmem:[%s4227_s4 + $0x100] sm:$0xff] %vm16_vm1, %v1879_v5  ;;  %v1541_v10 = vadd.f32 %v1477_v11, %v1221_v17  ;;  %v639_v5 = vsel %vm629_vm2, %v636_v23, %v638_v25  ;;  %v1008_v23 = vsel %vm918_vm3, %v1005_v15, %v1007_v62  ;;  %v2945_v17 = vld [vmem:[#allocation2 + $0xd0] sm:$0x3] }
  0xc0   :  { %v857_v36 = vadd.f32 %v639_v5, %v2698_v3  ;;  %v1178_v11 = vadd.f32 %v1008_v23, %v889_v44  ;;  %v855_v5 = vadd.f32 %v634_v49, %v2767_v50  ;;  %v265_v23 = vld [vmem:[#allocation2 + $0x100] sm:$0x3] }
  0xc1   :  { %vm1605_vm0 = vcmp.gt.f32.partialorder %v1541_v10, 0.3  ;;  %v1797_v30 = vmul.f32 0.2, %v1541_v10  ;;  %v714_v10 = vsel %vm629_vm2, %v711_v61, %v713_v14  ;;  %v157_v61 = vld [vmem:[%s4224_s1 + $0x1a8] sm:$0xff] }
  0xc2   :  { %v1669_v3 = vsel %vm1605_vm0, 1.0, %v4250_v22  ;;  %v887_v32 = vadd.f32 %v714_v10, %v2775_v20  ;;  %222 = vst.msk [vmem:[#allocation2 + $0x2c1] sm:$0xff] %vm16_vm1, %v157_v61 }
  0xc3   :  { %1733 = vst.msk [vmem:[%s4226_s3 + $0x70] sm:$0xff] %vm16_vm1, %v1669_v3  ;;  %v1861_v15 = vsel %vm1605_vm0, 0.0, %v1797_v30  ;;  %v367_v30 = vadd.f32 %v262_v35, %v2945_v17 }
  0xc6   :  { %v1253_v41 = vld [vmem:[%s4225_s2 + $0x170] sm:$0xff]  ;;  %v1210_v25 = vld [vmem:[%s4225_s2 + $0x18] sm:$0xff] }
  0xc7   :  { %v1573_v57 = vadd.f32 %v1509_v42, %v1253_v41  ;;  %v1146_v41 = vadd.f32 %v928_v4, %v857_v36  ;;  %v1242_v42 = vld [vmem:[%s4225_s2 + $0x118] sm:$0xff]  ;;  %v1498_v4 = vmul.f32 %v1321_v1, %v1178_v11  ;;  %v1002_v36 = vrot.slane %v487_v6, 2 }
  0xc8   :  { %1925 = vst.msk [vmem:[%s4227_s4 + $0x70] sm:$0xff] %vm16_vm1, %v1861_v15 }
  0xc9   :  { %vm1637_vm5 = vcmp.gt.f32.partialorder %v1573_v57, 0.3  ;;  %v1829_v51 = vmul.f32 0.2, %v1573_v57  ;;  %v1466_v62 = vmul.f32 %v1321_v1, %v1146_v41  ;;  %v922_v57 = vrot.slane %v439_v28, 2  ;;  %v158_v28 = vld [vmem:[%s4224_s1 + $0x1b0] sm:$0xff] }
  0xca   :  { %v1701_v43 = vsel %vm1637_vm5, 1.0, %v4250_v22  ;;  %v414_v1 = vadd.f32 %v2824_v56, %v2812_v40  ;;  %v1562_v6 = vadd.f32 %v1498_v4, %v1242_v42  ;;  %v1003_v3 = vsel %vm918_vm3, %v1000_v16, %v1002_v36  ;;  %v319_v41 = vld [vmem:[#allocation2 + $0x2b0] sm:$0x3]  ;;  %v3014_v16 = vld [vmem:[#allocation2 + $0x2a8] sm:$0xff]  ;;  %223 = vst.msk [vmem:[#allocation2 + $0x2d1] sm:$0xff] %vm16_vm1, %v158_v28  ;;  %v159_v36 = vld [vmem:[%s4224_s1 + $0x1b8] sm:$0xff] }
  0xcb   :  { %1765 = vst.msk [vmem:[%s4226_s3 + $0x170] sm:$0xff] %vm16_vm1, %v1701_v43  ;;  %v1893_v52 = vsel %vm1637_vm5, 0.0, %v1829_v51  ;;  %v1530_v44 = vadd.f32 %v1466_v62, %v1210_v25  ;;  %v923_v14 = vsel %vm918_vm3, %v920_v54, %v922_v57  ;;  %v1311_v51 = vpop.permute.xlu0 %1310  ;;  %v3011_v43 = vadd.f32 %v2908_v13, %v2973_v19 }
  0xcc   :  { %1957 = vst.msk [vmem:[%s4227_s4 + $0x170] sm:$0xff] %vm16_vm1, %v1893_v52  ;;  %v1144_v20 = vadd.f32 %v923_v14, %v855_v5  ;;  %v1176_v54 = vadd.f32 %v1003_v3, %v887_v32  ;;  %vm1626_vm7 = vcmp.gt.f32.partialorder %v1562_v6, 0.3  ;;  %v1818_v11 = vmul.f32 0.2, %v1562_v6 }
  0xcd   :  { %vm1594_vm6 = vcmp.gt.f32.partialorder %v1530_v44, 0.3  ;;  %v1786_v50 = vmul.f32 0.2, %v1530_v44  ;;  %v463_v25 = vadd.f32 %v367_v30, %v265_v23  ;;  %v1690_v13 = vsel %vm1626_vm7, 1.0, %v4250_v22  ;;  %224 = vst.msk [vmem:[#allocation2 + $0x2d9] sm:$0xff] %vm16_vm1, %v159_v36 }
  0xce   :  { %v1658_v15 = vsel %vm1594_vm6, 1.0, %v4250_v22  ;;  %v1464_v45 = vmul.f32 %v1311_v51, %v1144_v20  ;;  %v1496_v52 = vmul.f32 %v1311_v51, %v1176_v54  ;;  %1754 = vst.msk [vmem:[%s4226_s3 + $0x118] sm:$0xff] %vm16_vm1, %v1690_v13  ;;  %v1882_v42 = vsel %vm1626_vm7, 0.0, %v1818_v11  ;;  %v1391_v54 = vpop.permute.xlu2 %1390  ;;  %v1989_v11 = vld [vmem:[#allocation2 + $0x68] sm:$0xff]  ;;  %v128_v36 = vld [vmem:[%s4224_s1 + $0xc0] sm:$0xff] }
  0xcf   :  { %1722 = vst.msk [vmem:[%s4226_s3 + $0x18] sm:$0xff] %vm16_vm1, %v1658_v15  ;;  %v1850_v49 = vsel %vm1594_vm6, 0.0, %v1786_v50  ;;  %v3029_v62 = vadd.f32 %v414_v1, %v3014_v16  ;;  %v511_v10 = vadd.f32 %v415_v18, %v319_v41  ;;  %v671_v5 = vrot.slane %v3011_v43, 1  ;;  %v1988_v15 = vld [vmem:[#allocation2 + $0x50] sm:$0xff] }
  0xd0   :  { %v673_v32 = vrot.slane %v463_v25, 1  ;;  %v960_v57 = vrot.slane %v3011_v43, 2  ;;  %v962_v23 = vrot.slane %v463_v25, 2  ;;  %v351_v25 = vadd.f32 %v1989_v11, %v1988_v15  ;;  %193 = vst.msk [vmem:[#allocation2 + $0x139] sm:$0xff] %vm16_vm1, %v128_v36  ;;  %v3124_v36 = vld [vmem:[#allocation2 + $0xf0] sm:$0xff] }
  0xd1   :  { %v751_v61 = vrot.slane %v3029_v62, 1  ;;  %v753_v44 = vrot.slane %v511_v10, 1  ;;  %v4249_v30 = vrot.slane %v3029_v62, 2  ;;  %v1042_v20 = vrot.slane %v511_v10, 2  ;;  %v1992_v10 = vld [vmem:[#allocation2 + $0x48] sm:$0xff] }
  0xd2   :  { %v674_v18 = vsel %vm629_vm2, %v671_v5, %v673_v32  ;;  %v963_v41 = vsel %vm918_vm3, %v960_v57, %v962_v23  ;;  %v352_v13 = vadd.f32 %v2396_v34, %v2392_v33  ;;  %v129_v33 = vld [vmem:[%s4224_s1 + $0xc8] sm:$0xff]  ;;  %v1994_v23 = vld [vmem:[#allocation2 + $0x1f8] sm:$0xff] }
  0xd3   :  { %v1208_v35 = vld [vmem:[%s4225_s2 + $0x8] sm:$0xff]  ;;  %v754_v3 = vsel %vm629_vm2, %v751_v61, %v753_v44  ;;  %v1043_v34 = vsel %vm918_vm3, %v4249_v30, %v1042_v20  ;;  %194 = vst.msk [vmem:[#allocation2 + $0x141] sm:$0xff] %vm16_vm1, %v129_v33 }
  0xd4   :  { %v1240_v56 = vld [vmem:[%s4225_s2 + $0x108] sm:$0xff]  ;;  %v1528_v31 = vadd.f32 %v1464_v45, %v1208_v35  ;;  %v903_v51 = vadd.f32 %v754_v3, %v3029_v62  ;;  %v1990_v45 = vld [vmem:[#allocation2 + $0x200] sm:$0xff]  ;;  %v448_v44 = vadd.f32 %v352_v13, %v2556_v39 }
  0xd5   :  { %1914 = vst.msk [vmem:[%s4227_s4 + $0x18] sm:$0xff] %vm16_vm1, %v1850_v49  ;;  %v1560_v4 = vadd.f32 %v1496_v52, %v1240_v56  ;;  %v871_v56 = vadd.f32 %v674_v18, %v3011_v43  ;;  %v1991_v52 = vld [vmem:[#allocation2 + $0x218] sm:$0xff]  ;;  %v266_v33 = vld [vmem:[#allocation2 + $0x108] sm:$0xff] }
  0xd6   :  { %1946 = vst.msk [vmem:[%s4227_s4 + $0x118] sm:$0xff] %vm16_vm1, %v1882_v42  ;;  %vm1592_vm8 = vcmp.gt.f32.partialorder %v1528_v31, 0.3  ;;  %v1784_v1 = vmul.f32 0.2, %v1528_v31  ;;  %v399_v42 = vadd.f32 %v1991_v52, %v1990_v45  ;;  %v400_v31 = vadd.f32 %v2447_v60, %v2443_v58 }
  0xd7   :  { %vm1624_vm9 = vcmp.gt.f32.partialorder %v1560_v4, 0.3  ;;  %v1656_v28 = vsel %vm1592_vm8, 1.0, %v4250_v22  ;;  %v1816_v14 = vmul.f32 0.2, %v1560_v4  ;;  %v1160_v49 = vadd.f32 %v963_v41, %v871_v56  ;;  %v1993_v4 = vld [vmem:[#allocation2 + $0x60] sm:$0xff] }
  0xd8   :  { %v1688_v6 = vsel %vm1624_vm9, 1.0, %v4250_v22  ;;  %1720 = vst.msk [vmem:[%s4226_s3 + $0x8] sm:$0xff] %vm16_vm1, %v1656_v28  ;;  %v1848_v35 = vsel %vm1592_vm8, 0.0, %v1784_v1  ;;  %v350_v32 = vadd.f32 %v1993_v4, %v1992_v10  ;;  %v3093_v60 = vadd.f32 %v351_v25, %v2534_v26  ;;  %v1995_v1 = vld [vmem:[#allocation2 + $0x210] sm:$0xff]  ;;  %v160_v28 = vld [vmem:[%s4224_s1 + $0x1c0] sm:$0xff]  ;;  %v161_v26 = vld [vmem:[%s4224_s1 + $0x1c8] sm:$0xff] }
  0xd9   :  { %1752 = vst.msk [vmem:[%s4226_s3 + $0x108] sm:$0xff] %vm16_vm1, %v1688_v6  ;;  %v1880_v50 = vsel %vm1624_vm9, 0.0, %v1816_v14  ;;  %v398_v18 = vadd.f32 %v1995_v1, %v1994_v23  ;;  %v1192_v6 = vadd.f32 %v1043_v34, %v903_v51  ;;  %v1480_v14 = vmul.f32 %v1391_v54, %v1160_v49 }
  0xda   :  { %1912 = vst.msk [vmem:[%s4227_s4 + $0x8] sm:$0xff] %vm16_vm1, %v1848_v35  ;;  %v3100_v3 = vadd.f32 %v399_v42, %v2573_v59  ;;  %v496_v35 = vadd.f32 %v400_v31, %v2575_v0  ;;  %v646_v56 = vrot.slane %v3093_v60, 1  ;;  %v648_v41 = vrot.slane %v448_v44, 1 }
  0xdb   :  { %1944 = vst.msk [vmem:[%s4227_s4 + $0x108] sm:$0xff] %vm16_vm1, %v1880_v50  ;;  %v935_v51 = vrot.slane %v3093_v60, 2  ;;  %v937_v50 = vrot.slane %v448_v44, 2  ;;  %v1512_v59 = vmul.f32 %v1391_v54, %v1192_v6  ;;  %v1341_v44 = vpop.permute.xlu1 %1340  ;;  %v446_v23 = vadd.f32 %v350_v32, %v2528_v24 }
  0xdc   :  { %v726_v20 = vrot.slane %v3100_v3, 1  ;;  %v728_v15 = vrot.slane %v496_v35, 1  ;;  %225 = vst.msk [vmem:[#allocation2 + $0x2e9] sm:$0xff] %vm16_vm1, %v160_v28  ;;  %v649_v11 = vsel %vm629_vm2, %v646_v56, %v648_v41  ;;  %v1015_v13 = vrot.slane %v3100_v3, 2 }
  0xdd   :  { %v938_v25 = vsel %vm918_vm3, %v935_v51, %v937_v50  ;;  %v1017_v49 = vrot.slane %v496_v35, 2  ;;  %226 = vst.msk [vmem:[#allocation2 + $0x2f1] sm:$0xff] %vm16_vm1, %v161_v26  ;;  %v861_v31 = vadd.f32 %v649_v11, %v3093_v60  ;;  %v494_v6 = vadd.f32 %v398_v18, %v2551_v37  ;;  %v320_v35 = vld [vmem:[#allocation2 + $0x2b8] sm:$0xff]  ;;  %v3158_v11 = vld [vmem:[#allocation2 + $0x2c0] sm:$0xff] }
  0xde   :  { %v729_v54 = vsel %vm629_vm2, %v726_v20, %v728_v15  ;;  %v645_v37 = vrot.slane %v446_v23, 1  ;;  %v934_v18 = vrot.slane %v446_v23, 2  ;;  %v3156_v15 = vld [vmem:[#allocation2 + $0x120] sm:$0xff] }
  0xdf   :  { %v893_v10 = vadd.f32 %v729_v54, %v3100_v3  ;;  %v1018_v4 = vsel %vm918_vm3, %v1015_v13, %v1017_v49  ;;  %v1150_v1 = vadd.f32 %v938_v25, %v861_v31  ;;  %v3139_v3 = vld [vmem:[#allocation2 + $0x2a0] sm:$0xff] }
  0xe0   :  { %v647_v25 = vsel %vm629_vm2, %v645_v37, %v646_v56  ;;  %v936_v49 = vsel %vm918_vm3, %v934_v18, %v935_v51  ;;  %v3171_v56 = vld [vmem:[#allocation2 + $0x2d8] sm:$0xff] }
  0xe1   :  { %v1182_v28 = vadd.f32 %v1018_v4, %v893_v10  ;;  %v1470_v41 = vmul.f32 %v1341_v44, %v1150_v1  ;;  %v860_v10 = vadd.f32 %v647_v25, %v446_v23 }
  0xe2   :  { %v1224_v58 = vld [vmem:[%s4225_s2 + $0x88] sm:$0xff] }
  0xe3   :  { %v1256_v39 = vld [vmem:[%s4225_s2 + $0x188] sm:$0xff]  ;;  %v1544_v0 = vadd.f32 %v1480_v14, %v1224_v58  ;;  %v3137_v14 = vld [vmem:[#allocation2 + $0x110] sm:$0xff]  ;;  %v1502_v50 = vmul.f32 %v1341_v44, %v1182_v28 }
  0xe4   :  { %v1576_v45 = vadd.f32 %v1512_v59, %v1256_v39  ;;  %v371_v39 = vadd.f32 %v266_v33, %v3124_v36  ;;  %v725_v59 = vrot.slane %v494_v6, 1  ;;  %v3169_v44 = vld [vmem:[#allocation2 + $0x2d0] sm:$0xff] }
  0xe5   :  { %vm1608_vm10 = vcmp.gt.f32.partialorder %v1544_v0, 0.3  ;;  %v1800_v52 = vmul.f32 0.2, %v1544_v0  ;;  %v1014_v0 = vrot.slane %v494_v6, 2 }
  0xe6   :  { %v1672_v42 = vsel %vm1608_vm10, 1.0, %v4250_v22  ;;  %vm1640_vm11 = vcmp.gt.f32.partialorder %v1576_v45, 0.3  ;;  %v1832_v34 = vmul.f32 0.2, %v1576_v45  ;;  %v372_v45 = vadd.f32 %v3137_v14, %v2973_v19 }
  0xe7   :  { %1736 = vst.msk [vmem:[%s4226_s3 + $0x88] sm:$0xff] %vm16_vm1, %v1672_v42  ;;  %v1864_v58 = vsel %vm1608_vm10, 0.0, %v1800_v52  ;;  %v1704_v60 = vsel %vm1640_vm11, 1.0, %v4250_v22  ;;  %v419_v52 = vadd.f32 %v320_v35, %v3139_v3  ;;  %v727_v31 = vsel %vm629_vm2, %v725_v59, %v726_v20 }
  0xe8   :  { %1928 = vst.msk [vmem:[%s4227_s4 + $0x88] sm:$0xff] %vm16_vm1, %v1864_v58  ;;  %v1896_v24 = vsel %vm1640_vm11, 0.0, %v1832_v34  ;;  %v892_v4 = vadd.f32 %v727_v31, %v494_v6  ;;  %v1016_v33 = vsel %vm918_vm3, %v1014_v0, %v1015_v13  ;;  %v1336_v34 = vpop.permute.xlu0 %1335  ;;  %v3167_v58 = vld [vmem:[#allocation2 + $0x128] sm:$0xff]  ;;  %v420_v19 = vadd.f32 %v3158_v11, %v3014_v16 }
  0xe9   :  { %1768 = vst.msk [vmem:[%s4226_s3 + $0x188] sm:$0xff] %vm16_vm1, %v1704_v60  ;;  %v467_v51 = vadd.f32 %v371_v39, %v3156_v15  ;;  %v1149_v20 = vadd.f32 %v936_v49, %v860_v10 }
  0xea   :  { %v1181_v28 = vadd.f32 %v1016_v33, %v892_v4  ;;  %v3197_v39 = vadd.f32 %v420_v19, %v3171_v56  ;;  %v3214_v4 = vld [vmem:[#allocation2 + $0x118] sm:$0x3] }
  0xeb   :  { %v969_v25 = vrot.slane %v467_v51, 2 }
  0xec   :  { %v1501_v18 = vmul.f32 %v1336_v34, %v1181_v28  ;;  %v4235_v10 = vrot.slane %v3197_v39, 2 }
  0xef   :  { %v1214_v32 = vld [vmem:[%s4225_s2 + $0x38] sm:$0xff] }
  0xf0   :  { %v1246_v26 = vld [vmem:[%s4225_s2 + $0x138] sm:$0xff]  ;;  %v1534_v54 = vadd.f32 %v1470_v41, %v1214_v32  ;;  %v3189_v32 = vadd.f32 %v372_v45, %v3167_v58  ;;  %v680_v41 = vrot.slane %v467_v51, 1  ;;  %v4236_v45 = vrot.slane %v3197_v39, 1 }
  0xf1   :  { %1960 = vst.msk [vmem:[%s4227_s4 + $0x188] sm:$0xff] %vm16_vm1, %v1896_v24  ;;  %v1566_v42 = vadd.f32 %v1502_v50, %v1246_v26  ;;  %v1469_v24 = vmul.f32 %v1336_v34, %v1149_v20  ;;  %v515_v26 = vadd.f32 %v419_v52, %v3169_v44 }
  0xf2   :  { %vm1598_vm12 = vcmp.gt.f32.partialorder %v1534_v54, 0.3  ;;  %v1790_v60 = vmul.f32 0.2, %v1534_v54  ;;  %v4238_v59 = vrot.slane %v3189_v32, 1  ;;  %v4237_v52 = vrot.slane %v3189_v32, 2 }
  0xf3   :  { %vm1630_vm13 = vcmp.gt.f32.partialorder %v1566_v42, 0.3  ;;  %v1662_v23 = vsel %vm1598_vm12, 1.0, %v4250_v22  ;;  %v1822_v1 = vmul.f32 0.2, %v1566_v42  ;;  %v760_v0 = vrot.slane %v515_v26, 1 }
  0xf4   :  { %v1694_v13 = vsel %vm1630_vm13, 1.0, %v4250_v22  ;;  %1726 = vst.msk [vmem:[%s4226_s3 + $0x38] sm:$0xff] %vm16_vm1, %v1662_v23  ;;  %v1854_v16 = vsel %vm1598_vm12, 0.0, %v1790_v60  ;;  %v1049_v54 = vrot.slane %v515_v26, 2  ;;  %v682_v31 = vsel %vm629_vm2, %v680_v41, %v4238_v59 }
  0xf5   :  { %1758 = vst.msk [vmem:[%s4226_s3 + $0x138] sm:$0xff] %vm16_vm1, %v1694_v13  ;;  %v1886_v37 = vsel %vm1630_vm13, 0.0, %v1822_v1  ;;  %v762_v19 = vsel %vm629_vm2, %v760_v0, %v4236_v45  ;;  %v874_v23 = vadd.f32 %v682_v31, %v467_v51  ;;  %v271_v1 = vld [vmem:[#allocation2 + $0x130] sm:$0x3]  ;;  %v3245_v0 = vld [vmem:[#allocation2 + $0x240] sm:$0xff]  ;;  %v131_v31 = vld [vmem:[%s4224_s1 + $0xd8] sm:$0xff] }
  0xf6   :  { %v906_v13 = vadd.f32 %v762_v19, %v515_v26  ;;  %v130_v26 = vld [vmem:[%s4224_s1 + $0xd0] sm:$0xff]  ;;  %196 = vst.msk [vmem:[#allocation2 + $0x159] sm:$0xff] %vm16_vm1, %v131_v31 }
  0xf7   :  { %195 = vst.msk [vmem:[#allocation2 + $0x151] sm:$0xff] %vm16_vm1, %v130_v26 }
  0xf8   :  { %v1213_v6 = vld [vmem:[%s4225_s2 + $0x30] sm:$0xff] }
  0xf9   :  { %v1245_v35 = vld [vmem:[%s4225_s2 + $0x130] sm:$0xff]  ;;  %v1533_v50 = vadd.f32 %v1469_v24, %v1213_v6  ;;  %v971_v6 = vsel %vm918_vm3, %v969_v25, %v4237_v52  ;;  %v1996_v24 = vld [vmem:[#allocation2 + $0x78] sm:$0xff] }
  0xfa   :  { %1918 = vst.msk [vmem:[%s4227_s4 + $0x38] sm:$0xff] %vm16_vm1, %v1854_v16  ;;  %v1565_v49 = vadd.f32 %v1501_v18, %v1245_v35  ;;  %v1051_v16 = vsel %vm918_vm3, %v1049_v54, %v4235_v10  ;;  %v1406_v35 = vpop.permute.xlu2 %1405  ;;  %v1163_v18 = vadd.f32 %v971_v6, %v874_v23  ;;  %v2001_v54 = vld [vmem:[#allocation2 + $0x88] sm:$0x3]  ;;  %v3267_v6 = vadd.f32 %v271_v1, %v3214_v4  ;;  %v3321_v10 = vld [vmem:[#allocation2 + $0x140] sm:$0xff] }
  0xfb   :  { %1950 = vst.msk [vmem:[%s4227_s4 + $0x138] sm:$0xff] %vm16_vm1, %v1886_v37  ;;  %vm1597_vm14 = vcmp.gt.f32.partialorder %v1533_v50, 0.3  ;;  %v1789_v42 = vmul.f32 0.2, %v1533_v50  ;;  %v3235_v37 = vld [vmem:[#allocation2 + $0x90] sm:$0xff]  ;;  %v1195_v41 = vadd.f32 %v1051_v16, %v906_v13  ;;  %v3264_v13 = vadd.f32 %v3167_v58, %v3137_v14 }
  0xfc   :  { %vm1629_vm15 = vcmp.gt.f32.partialorder %v1565_v49, 0.3  ;;  %v1661_v33 = vsel %vm1597_vm14, 1.0, %v4250_v22  ;;  %v1821_v34 = vmul.f32 0.2, %v1565_v49  ;;  %v356_v51 = vadd.f32 %v3235_v37, %v1996_v24  ;;  %v1998_v50 = vld [vmem:[#allocation2 + $0x228] sm:$0xff] }
  0xfd   :  { %v1693_v60 = vsel %vm1629_vm15, 1.0, %v4250_v22  ;;  %1725 = vst.msk [vmem:[%s4226_s3 + $0x30] sm:$0xff] %vm16_vm1, %v1661_v33  ;;  %v1853_v20 = vsel %vm1597_vm14, 0.0, %v1789_v42  ;;  %v404_v25 = vadd.f32 %v3245_v0, %v1998_v50  ;;  %v2000_v49 = vld [vmem:[#allocation2 + $0x70] sm:$0x3]  ;;  %v1483_v16 = vmul.f32 %v1406_v35, %v1163_v18  ;;  %v133_v58 = vld [vmem:[%s4224_s1 + $0xe8] sm:$0xff] }
  0xfe   :  { %1757 = vst.msk [vmem:[%s4226_s3 + $0x130] sm:$0xff] %vm16_vm1, %v1693_v60  ;;  %v1885_v28 = vsel %vm1629_vm15, 0.0, %v1821_v34  ;;  %v355_v42 = vadd.f32 %v2001_v54, %v2000_v49  ;;  %v452_v19 = vadd.f32 %v356_v51, %v2736_v47  ;;  %v2002_v60 = vld [vmem:[#allocation2 + $0x220] sm:$0x3]  ;;  %v1515_v24 = vmul.f32 %v1406_v35, %v1195_v41  ;;  %v3282_v54 = vld [vmem:[#allocation2 + $0x250] sm:$0x3] }
  0xff   :  { %1917 = vst.msk [vmem:[%s4227_s4 + $0x30] sm:$0xff] %vm16_vm1, %v1853_v20  ;;  %v2003_v20 = vld [vmem:[#allocation2 + $0x238] sm:$0x3]  ;;  %v500_v50 = vadd.f32 %v404_v25, %v2804_v53  ;;  %v3273_v49 = vld [vmem:[#allocation2 + $0xa0] sm:$0x3]  ;;  %v423_v53 = vadd.f32 %v3171_v56, %v3158_v11 }
 0x100   :  { %1949 = vst.msk [vmem:[%s4227_s4 + $0x130] sm:$0xff] %vm16_vm1, %v1885_v28  ;;  %v403_v23 = vadd.f32 %v2003_v20, %v2002_v60  ;;  %v132_v28 = vld [vmem:[%s4224_s1 + $0xe0] sm:$0xff]  ;;  %v3276_v47 = vadd.f32 %v3273_v49, %v355_v42  ;;  %v655_v1 = vrot.slane %v452_v19, 1  ;;  %v944_v51 = vrot.slane %v452_v19, 2  ;;  %v162_v60 = vld [vmem:[%s4224_s1 + $0x1d0] sm:$0xff] }
 0x101   :  { %v735_v25 = vrot.slane %v500_v50, 1  ;;  %v1024_v42 = vrot.slane %v500_v50, 2  ;;  %197 = vst.msk [vmem:[#allocation2 + $0x169] sm:$0xff] %vm16_vm1, %v132_v28  ;;  %v3305_v28 = vld [vmem:[#allocation2 + $0x2e0] sm:$0x3] }
 0x102   :  { %v499_v18 = vadd.f32 %v3282_v54, %v403_v23  ;;  %v657_v26 = vsel %vm629_vm2, %v655_v1, %v656_v2  ;;  %v946_v56 = vsel %vm918_vm3, %v944_v51, %v945_v9  ;;  %v653_v31 = vrot.slane %v3276_v47, 1  ;;  %198 = vst.msk [vmem:[#allocation2 + $0x171] sm:$0xff] %vm16_vm1, %v133_v58  ;;  %v3303_v23 = vld [vmem:[#allocation2 + $0x2c8] sm:$0x3]  ;;  %v1356_v51 = vpop.permute.xlu1 %1355 }
 0x103   :  { %v737_v20 = vsel %vm629_vm2, %v735_v25, %v736_v7  ;;  %227 = vst.msk [vmem:[#allocation2 + $0x301] sm:$0xff] %vm16_vm1, %v162_v60  ;;  %v4261_v58 = vrot.slane %v2638_v46, 2 }
 0x104   :  { %v896_v7 = vadd.f32 %v737_v20, %v500_v50  ;;  %v163_v20 = vld [vmem:[%s4224_s1 + $0x1d8] sm:$0xff] }
 0x105   :  { %v1026_v1 = vsel %vm918_vm3, %v1024_v42, %v4261_v58  ;;  %v4263_v42 = vrot.slane %v2599_v12, 1  ;;  %v165_v58 = vld [vmem:[%s4224_s1 + $0x1e8] sm:$0xff]  ;;  %228 = vst.msk [vmem:[#allocation2 + $0x309] sm:$0xff] %vm16_vm1, %v163_v20 }
 0x106   :  { %230 = vst.msk [vmem:[#allocation2 + $0x321] sm:$0xff] %vm16_vm1, %v165_v58 }
 0x107   :  { %v1227_v33 = vld [vmem:[%s4225_s2 + $0xa0] sm:$0xff]  ;;  %v1217_v46 = vld [vmem:[%s4225_s2 + $0x50] sm:$0xff] }
 0x108   :  { %v1259_v34 = vld [vmem:[%s4225_s2 + $0x1a0] sm:$0xff]  ;;  %v1547_v35 = vadd.f32 %v1483_v16, %v1227_v33  ;;  %v733_v33 = vrot.slane %v499_v18, 1  ;;  %v864_v16 = vadd.f32 %v657_v26, %v452_v19  ;;  %v3323_v19 = vld [vmem:[#allocation2 + $0x148] sm:$0x3] }
 0x109   :  { %v1579_v41 = vadd.f32 %v1515_v24, %v1259_v34 }
 0x10a   :  { %vm1611_vm4 = vcmp.gt.f32.partialorder %v1547_v35, 0.3  ;;  %v1803_v34 = vmul.f32 0.2, %v1547_v35  ;;  %v4262_v35 = vrot.slane %v2553_v38, 1  ;;  %v1153_v60 = vadd.f32 %v946_v56, %v864_v16 }
 0x10b   :  { %vm1643_vm0 = vcmp.gt.f32.partialorder %v1579_v41, 0.3  ;;  %v1675_v29 = vsel %vm1611_vm4, 1.0, %v4250_v22  ;;  %v1835_v9 = vmul.f32 0.2, %v1579_v41  ;;  %v734_v26 = vsel %vm629_vm2, %v4263_v42, %v733_v33  ;;  %v1351_v42 = vpop.permute.xlu0 %1350 }
 0x10c   :  { %v1707_v2 = vsel %vm1643_vm0, 1.0, %v4250_v22  ;;  %1739 = vst.msk [vmem:[%s4226_s3 + $0xa0] sm:$0xff] %vm16_vm1, %v1675_v29  ;;  %v1867_v24 = vsel %vm1611_vm4, 0.0, %v1803_v34  ;;  %v654_v25 = vsel %vm629_vm2, %v4262_v35, %v653_v31  ;;  %v3337_v34 = vld [vmem:[#allocation2 + $0x2f0] sm:$0xff]  ;;  %v1185_v41 = vadd.f32 %v1026_v1, %v896_v7  ;;  %v3348_v33 = vld [vmem:[#allocation2 + $0x2f8] sm:$0x3] }
 0x10d   :  { %1771 = vst.msk [vmem:[%s4226_s3 + $0x1a0] sm:$0xff] %vm16_vm1, %v1707_v2  ;;  %v1899_v50 = vsel %vm1643_vm0, 0.0, %v1835_v9  ;;  %v863_v31 = vadd.f32 %v654_v25, %v2553_v38  ;;  %v895_v56 = vadd.f32 %v734_v26, %v2599_v12  ;;  %v942_v29 = vrot.slane %v3276_v47, 2  ;;  %v164_v9 = vld [vmem:[%s4224_s1 + $0x1e0] sm:$0xff] }
 0x10e   :  { %1931 = vst.msk [vmem:[%s4227_s4 + $0xa0] sm:$0xff] %vm16_vm1, %v1867_v24  ;;  %v1022_v2 = vrot.slane %v499_v18, 2  ;;  %v1473_v24 = vmul.f32 %v1356_v51, %v1153_v60  ;;  %v424_v47 = vadd.f32 %v3305_v28, %v3303_v23  ;;  %v3364_v18 = vadd.f32 %v3264_v13, %v3321_v10 }
 0x10f   :  { %1963 = vst.msk [vmem:[%s4227_s4 + $0x1a0] sm:$0xff] %vm16_vm1, %v1899_v50  ;;  %v472_v7 = vadd.f32 %v3267_v6, %v3323_v19  ;;  %v1505_v1 = vmul.f32 %v1356_v51, %v1185_v41  ;;  %v4264_v35 = vrot.slane %v2553_v38, 2  ;;  %v4265_v50 = vrot.slane %v2599_v12, 2 }
 0x110   :  { %v3378_v13 = vadd.f32 %v423_v53, %v3337_v34  ;;  %v1537_v6 = vadd.f32 %v1473_v24, %v1217_v46  ;;  %v3382_v52 = vadd.f32 %v424_v47, %v3348_v33  ;;  %229 = vst.msk [vmem:[#allocation2 + $0x319] sm:$0xff] %vm16_vm1, %v164_v9  ;;  %v4242_v51 = vrot.slane %v3364_v18, 1 }
 0x111   :  { %v943_v25 = vsel %vm918_vm3, %v4264_v35, %v942_v29  ;;  %v1023_v60 = vsel %vm918_vm3, %v4265_v50, %v1022_v2  ;;  %v688_v20 = vrot.slane %v472_v7, 1  ;;  %v977_v50 = vrot.slane %v472_v7, 2 }
 0x112   :  { %v1152_v26 = vadd.f32 %v943_v25, %v863_v31  ;;  %v1184_v45 = vadd.f32 %v1023_v60, %v895_v56  ;;  %v4241_v46 = vrot.slane %v3378_v13, 1  ;;  %vm1601_vm5 = vcmp.gt.f32.partialorder %v1537_v6, 0.3  ;;  %v2006_v60 = vld [vmem:[#allocation2 + $0x98] sm:$0xff] }
 0x113   :  { %v1793_v31 = vmul.f32 0.2, %v1537_v6  ;;  %v1665_v29 = vsel %vm1601_vm5, 1.0, %v4250_v22  ;;  %v689_v9 = vsel %vm629_vm2, %v4242_v51, %v688_v20  ;;  %v4240_v25 = vrot.slane %v3364_v18, 2 }
 0x114   :  { %v1472_v41 = vmul.f32 %v1351_v42, %v1152_v26  ;;  %v1504_v56 = vmul.f32 %v1351_v42, %v1184_v45  ;;  %1729 = vst.msk [vmem:[%s4226_s3 + $0x50] sm:$0xff] %vm16_vm1, %v1665_v29  ;;  %v877_v35 = vadd.f32 %v689_v9, %v3364_v18  ;;  %v2007_v42 = vld [vmem:[#allocation2 + $0xb0] sm:$0xff] }
 0x115   :  { %v1857_v24 = vsel %vm1601_vm5, 0.0, %v1793_v31  ;;  %v360_v6 = vadd.f32 %v2007_v42, %v2006_v60  ;;  %v978_v31 = vsel %vm918_vm3, %v4240_v25, %v977_v50  ;;  %v2010_v50 = vld [vmem:[#allocation2 + $0x260] sm:$0xff]  ;;  %v135_v42 = vld [vmem:[%s4224_s1 + $0xf8] sm:$0xff] }
 0x116   :  { %v1249_v16 = vld [vmem:[%s4225_s2 + $0x150] sm:$0xff]  ;;  %v1216_v12 = vld [vmem:[%s4225_s2 + $0x48] sm:$0xff]  ;;  %v1166_v9 = vadd.f32 %v978_v31, %v877_v35  ;;  %200 = vst.msk [vmem:[#allocation2 + $0x189] sm:$0xff] %vm16_vm1, %v135_v42 }
 0x117   :  { %v1569_v38 = vadd.f32 %v1505_v1, %v1249_v16  ;;  %v1248_v53 = vld [vmem:[%s4225_s2 + $0x148] sm:$0xff]  ;;  %v1536_v47 = vadd.f32 %v1472_v41, %v1216_v12  ;;  %v768_v1 = vrot.slane %v3382_v52, 1  ;;  %v4239_v41 = vrot.slane %v3378_v13, 2 }
 0x118   :  { %v1568_v58 = vadd.f32 %v1504_v56, %v1248_v53  ;;  %1921 = vst.msk [vmem:[%s4227_s4 + $0x50] sm:$0xff] %vm16_vm1, %v1857_v24  ;;  %v1421_v56 = vpop.permute.xlu2 %1420  ;;  %v3452_v35 = vld [vmem:[#allocation2 + $0x268] sm:$0x3] }
 0x119   :  { %vm1633_vm6 = vcmp.gt.f32.partialorder %v1569_v38, 0.3  ;;  %v1825_v2 = vmul.f32 0.2, %v1569_v38  ;;  %vm1600_vm7 = vcmp.gt.f32.partialorder %v1536_v47, 0.3  ;;  %v769_v53 = vsel %vm629_vm2, %v4241_v46, %v768_v1 }
 0x11a   :  { %v1697_v16 = vsel %vm1633_vm6, 1.0, %v4250_v22  ;;  %vm1632_vm8 = vcmp.gt.f32.partialorder %v1568_v58, 0.3  ;;  %v1664_v26 = vsel %vm1600_vm7, 1.0, %v4250_v22  ;;  %v1792_v12 = vmul.f32 0.2, %v1536_v47 }
 0x11b   :  { %1761 = vst.msk [vmem:[%s4226_s3 + $0x150] sm:$0xff] %vm16_vm1, %v1697_v16  ;;  %v1889_v45 = vsel %vm1633_vm6, 0.0, %v1825_v2  ;;  %v1696_v38 = vsel %vm1632_vm8, 1.0, %v4250_v22  ;;  %v1824_v7 = vmul.f32 0.2, %v1568_v58  ;;  %v909_v20 = vadd.f32 %v769_v53, %v3378_v13  ;;  %v2009_v1 = vld [vmem:[#allocation2 + $0x248] sm:$0xff] }
 0x11c   :  { %1953 = vst.msk [vmem:[%s4227_s4 + $0x150] sm:$0xff] %vm16_vm1, %v1889_v45  ;;  %v1856_v29 = vsel %vm1600_vm7, 0.0, %v1792_v12  ;;  %v1057_v2 = vrot.slane %v3382_v52, 2  ;;  %v3440_v16 = vld [vmem:[#allocation2 + $0xb8] sm:$0x3]  ;;  %v408_v52 = vadd.f32 %v2010_v50, %v2009_v1  ;;  %v409_v60 = vadd.f32 %v3452_v35, %v3282_v54  ;;  %v134_v58 = vld [vmem:[%s4224_s1 + $0xf0] sm:$0xff] }
 0x11d   :  { %1728 = vst.msk [vmem:[%s4226_s3 + $0x48] sm:$0xff] %vm16_vm1, %v1664_v26  ;;  %v361_v24 = vadd.f32 %v3440_v16, %v3273_v49  ;;  %v1888_v45 = vsel %vm1632_vm8, 0.0, %v1824_v7  ;;  %v3457_v49 = vadd.f32 %v360_v6, %v2777_v48  ;;  %v1486_v26 = vmul.f32 %v1421_v56, %v1166_v9  ;;  %v2012_v6 = vld [vmem:[#allocation2 + $0xa8] sm:$0xff]  ;;  %v166_v12 = vld [vmem:[%s4224_s1 + $0x1f0] sm:$0xff] }
 0x11e   :  { %1760 = vst.msk [vmem:[%s4226_s3 + $0x148] sm:$0xff] %vm16_vm1, %v1696_v38  ;;  %v1058_v54 = vsel %vm918_vm3, %v4239_v41, %v1057_v2  ;;  %v359_v38 = vadd.f32 %v2012_v6, %v3235_v37  ;;  %v3478_v7 = vadd.f32 %v408_v52, %v2812_v40  ;;  %v505_v31 = vadd.f32 %v409_v60, %v2947_v55  ;;  %v167_v2 = vld [vmem:[%s4224_s1 + $0x1f8] sm:$0xff] }
 0x11f   :  { %1920 = vst.msk [vmem:[%s4227_s4 + $0x48] sm:$0xff] %vm16_vm1, %v1856_v29  ;;  %v457_v48 = vadd.f32 %v361_v24, %v2945_v17  ;;  %v1198_v53 = vadd.f32 %v1058_v54, %v909_v20  ;;  %v661_v29 = vrot.slane %v3457_v49, 1  ;;  %v950_v20 = vrot.slane %v3457_v49, 2  ;;  %v3500_v54 = vld [vmem:[#allocation2 + $0x138] sm:$0xff] }
 0x120   :  { %199 = vst.msk [vmem:[#allocation2 + $0x181] sm:$0xff] %vm16_vm1, %v134_v58  ;;  %v741_v24 = vrot.slane %v3478_v7, 1  ;;  %v1030_v1 = vrot.slane %v3478_v7, 2 }
 0x121   :  { %v663_v9 = vrot.slane %v457_v48, 1  ;;  %v952_v40 = vrot.slane %v457_v48, 2  ;;  %v1518_v55 = vmul.f32 %v1421_v56, %v1198_v53  ;;  %231 = vst.msk [vmem:[#allocation2 + $0x331] sm:$0xff] %vm16_vm1, %v166_v12  ;;  %v1032_v12 = vrot.slane %v505_v31, 2  ;;  %v1371_v53 = vpop.permute.xlu1 %1370 }
 0x122   :  { %232 = vst.msk [vmem:[#allocation2 + $0x339] sm:$0xff] %vm16_vm1, %v167_v2  ;;  %v2013_v2 = vld [vmem:[#allocation2 + $0x258] sm:$0xff] }
 0x123   :  { %v664_v52 = vsel %vm629_vm2, %v661_v29, %v663_v9  ;;  %v3514_v9 = vld [vmem:[#allocation2 + $0xc0] sm:$0xff] }
 0x124   :  { %v867_v42 = vadd.f32 %v664_v52, %v3457_v49  ;;  %v3528_v52 = vld [vmem:[#allocation2 + $0x2e8] sm:$0xff] }
 0x126   :  { %v1230_v47 = vld [vmem:[%s4225_s2 + $0xb8] sm:$0xff] }
 0x127   :  { %1952 = vst.msk [vmem:[%s4227_s4 + $0x148] sm:$0xff] %vm16_vm1, %v1888_v45  ;;  %v1550_v37 = vadd.f32 %v1486_v26, %v1230_v47  ;;  %v743_v45 = vrot.slane %v505_v31, 1  ;;  %v953_v47 = vsel %vm918_vm3, %v950_v20, %v952_v40  ;;  %v3502_v26 = vld [vmem:[#allocation2 + $0x150] sm:$0xff]  ;;  %v455_v40 = vadd.f32 %v3514_v9, %v359_v38 }
 0x128   :  { %v1156_v49 = vadd.f32 %v953_v47, %v867_v42  ;;  %v1033_v31 = vsel %vm918_vm3, %v1030_v1, %v1032_v12  ;;  %v3530_v47 = vld [vmem:[#allocation2 + $0x300] sm:$0xff]  ;;  %v380_v38 = vadd.f32 %v3502_v26, %v3500_v54 }
 0x129   :  { %vm1614_vm9 = vcmp.gt.f32.partialorder %v1550_v37, 0.3  ;;  %v1806_v50 = vmul.f32 0.2, %v1550_v37  ;;  %v744_v56 = vsel %vm629_vm2, %v741_v24, %v743_v45  ;;  %v3525_v45 = vld [vmem:[#allocation2 + $0x270] sm:$0xff] }
 0x12a   :  { %v1678_v58 = vsel %vm1614_vm9, 1.0, %v4250_v22  ;;  %v899_v6 = vadd.f32 %v744_v56, %v3478_v7  ;;  %v1476_v42 = vmul.f32 %v1371_v53, %v1156_v49  ;;  %v3549_v49 = vld [vmem:[#allocation2 + $0x168] sm:$0xff] }
 0x12b   :  { %1742 = vst.msk [vmem:[%s4226_s3 + $0xb8] sm:$0xff] %vm16_vm1, %v1678_v58  ;;  %v1870_v48 = vsel %vm1614_vm9, 0.0, %v1806_v50 }
 0x12c   :  { %v1188_v56 = vadd.f32 %v1033_v31, %v899_v6  ;;  %v3551_v31 = vld [vmem:[#allocation2 + $0x308] sm:$0xff] }
 0x12e   :  { %v1262_v17 = vld [vmem:[%s4225_s2 + $0x1b8] sm:$0xff] }
 0x12f   :  { %v1582_v60 = vadd.f32 %v1518_v55, %v1262_v17  ;;  %v407_v17 = vadd.f32 %v2013_v2, %v3245_v0  ;;  %1934 = vst.msk [vmem:[%s4227_s4 + $0xb8] sm:$0xff] %vm16_vm1, %v1870_v48  ;;  %v3517_v55 = vld [vmem:[#allocation2 + $0x158] sm:$0xff]  ;;  %v660_v48 = vrot.slane %v455_v40, 1 }
 0x131   :  { %vm1646_vm10 = vcmp.gt.f32.partialorder %v1582_v60, 0.3  ;;  %v1838_v37 = vmul.f32 0.2, %v1582_v60  ;;  %v503_v50 = vadd.f32 %v3525_v45, %v407_v17  ;;  %v949_v17 = vrot.slane %v455_v40, 2 }
 0x132   :  { %v1710_v7 = vsel %vm1646_vm10, 1.0, %v4250_v22  ;;  %v1508_v60 = vmul.f32 %v1371_v53, %v1188_v56  ;;  %v662_v6 = vsel %vm629_vm2, %v660_v48, %v661_v29  ;;  %v1366_v56 = vpop.permute.xlu0 %1365  ;;  %v3558_v29 = vld [vmem:[#allocation2 + $0x170] sm:$0xff] }
 0x133   :  { %1774 = vst.msk [vmem:[%s4226_s3 + $0x1b8] sm:$0xff] %vm16_vm1, %v1710_v7  ;;  %v1902_v58 = vsel %vm1646_vm10, 0.0, %v1838_v37  ;;  %v740_v2 = vrot.slane %v503_v50, 1  ;;  %v1029_v59 = vrot.slane %v503_v50, 2  ;;  %v381_v7 = vadd.f32 %v3517_v55, %v3321_v10 }
 0x134   :  { %v866_v25 = vadd.f32 %v662_v6, %v455_v40  ;;  %v951_v46 = vsel %vm918_vm3, %v949_v17, %v950_v20  ;;  %4266 = vst [vmem:[#allocation3_spill] sm:$0xff] %v3558_v29  ;;  %v3566_v40 = vld [vmem:[#allocation2 + $0x320] sm:$0xff]  ;;  %v476_v20 = vadd.f32 %v380_v38, %v3549_v49 }
 0x135   :  { %v742_v41 = vsel %vm629_vm2, %v740_v2, %v741_v24  ;;  %v1031_v51 = vsel %vm918_vm3, %v1029_v59, %v1030_v1  ;;  %4267 = vst [vmem:[#allocation4_spill] sm:$0xff] %v3566_v40  ;;  %v429_v59 = vadd.f32 %v3551_v31, %v3337_v34 }
 0x136   :  { %v1220_v0 = vld [vmem:[%s4225_s2 + $0x68] sm:$0xff]  ;;  %v1155_v63 = vadd.f32 %v951_v46, %v866_v25  ;;  %v984_v6 = vrot.slane %v476_v20, 2 }
 0x137   :  { %1966 = vst.msk [vmem:[%s4227_s4 + $0x1b8] sm:$0xff] %vm16_vm1, %v1902_v58  ;;  %v1540_v37 = vadd.f32 %v1476_v42, %v1220_v0  ;;  %v428_v58 = vadd.f32 %v3530_v47, %v3528_v52  ;;  %v898_v0 = vadd.f32 %v742_v41, %v503_v50  ;;  %v3560_v42 = vld [vmem:[#allocation2 + $0x318] sm:$0xff]  ;;  %v3592_v17 = vadd.f32 %v429_v59, %v3566_v40 }
 0x138   :  { %v1475_v38 = vmul.f32 %v1366_v56, %v1155_v63 }
 0x139   :  { %vm1604_vm11 = vcmp.gt.f32.partialorder %v1540_v37, 0.3  ;;  %v1796_v53 = vmul.f32 0.2, %v1540_v37  ;;  %v1187_v46 = vadd.f32 %v1031_v51, %v898_v0  ;;  %v524_v2 = vadd.f32 %v428_v58, %v3560_v42  ;;  %4269 = vst [vmem:[#allocation6_spill] sm:$0xff] %v3592_v17 }
 0x13a   :  { %v1668_v48 = vsel %vm1604_vm11, 1.0, %v4250_v22 }
 0x13b   :  { %1732 = vst.msk [vmem:[%s4226_s3 + $0x68] sm:$0xff] %vm16_vm1, %v1668_v48  ;;  %v1860_v1 = vsel %vm1604_vm11, 0.0, %v1796_v53  ;;  %v1507_v51 = vmul.f32 %v1366_v56, %v1187_v46  ;;  %v775_v37 = vrot.slane %v524_v2, 1  ;;  %v4247_v53 = vrot.slane %v3592_v17, 1 }
 0x13c   :  { %v1064_v56 = vrot.slane %v524_v2, 2 }
 0x13e   :  { %v1252_v12 = vld [vmem:[%s4225_s2 + $0x168] sm:$0xff]  ;;  %v1219_v24 = vld [vmem:[%s4225_s2 + $0x60] sm:$0xff] }
 0x13f   :  { %v1572_v8 = vadd.f32 %v1508_v60, %v1252_v12  ;;  %1924 = vst.msk [vmem:[%s4227_s4 + $0x68] sm:$0xff] %vm16_vm1, %v1860_v1  ;;  %v3584_v12 = vadd.f32 %v381_v7, %v3558_v29  ;;  %v695_v60 = vrot.slane %v476_v20, 1  ;;  %v1539_v63 = vadd.f32 %v1475_v38, %v1219_v24  ;;  %v3605_v1 = vld [vmem:[#allocation2 + $0x160] sm:$0x3] }
 0x141   :  { %vm1636_vm12 = vcmp.gt.f32.partialorder %v1572_v8, 0.3  ;;  %v1828_v41 = vmul.f32 0.2, %v1572_v8  ;;  %4268 = vst [vmem:[#allocation5_spill] sm:$0xff] %v3584_v12  ;;  %v4248_v7 = vrot.slane %v3584_v12, 1 }
 0x142   :  { %v1700_v25 = vsel %vm1636_vm12, 1.0, %v4250_v22  ;;  %v4246_v0 = vrot.slane %v3584_v12, 2  ;;  %vm1603_vm13 = vcmp.gt.f32.partialorder %v1539_v63, 0.3  ;;  %v1795_v48 = vmul.f32 0.2, %v1539_v63 }
 0x143   :  { %1764 = vst.msk [vmem:[%s4226_s3 + $0x168] sm:$0xff] %vm16_vm1, %v1700_v25  ;;  %v1892_v8 = vsel %vm1636_vm12, 0.0, %v1828_v41  ;;  %v697_v59 = vsel %vm629_vm2, %v695_v60, %v4248_v7  ;;  %v4245_v41 = vrot.slane %v3592_v17, 2  ;;  %v1667_v24 = vsel %vm1603_vm13, 1.0, %v4250_v22  ;;  %v3616_v60 = vld [vmem:[#allocation2 + $0x178] sm:$0x3] }
 0x144   :  { %v777_v25 = vsel %vm629_vm2, %v775_v37, %v4247_v53  ;;  %1731 = vst.msk [vmem:[%s4226_s3 + $0x60] sm:$0xff] %vm16_vm1, %v1667_v24  ;;  %v1859_v38 = vsel %vm1603_vm13, 0.0, %v1795_v48  ;;  %v986_v37 = vsel %vm918_vm3, %v984_v6, %v4246_v0  ;;  %v1436_v24 = vpop.permute.xlu2 %1435  ;;  %v3628_v48 = vld [vmem:[#allocation2 + $0xd8] sm:$0xff]  ;;  %v3692_v12 = vld [vmem:[#allocation2 + $0x188] sm:$0xff] }
 0x145   :  { %4273 = vst [vmem:[#allocation7_spill] sm:$0xff] %v3692_v12 }
 0x146   :  { %v1251_v50 = vld [vmem:[%s4225_s2 + $0x160] sm:$0xff] }
 0x147   :  { %1956 = vst.msk [vmem:[%s4227_s4 + $0x168] sm:$0xff] %vm16_vm1, %v1892_v8  ;;  %v1571_v58 = vadd.f32 %v1507_v51, %v1251_v50  ;;  %v880_v8 = vadd.f32 %v697_v59, %v476_v20  ;;  %v912_v51 = vadd.f32 %v777_v25, %v524_v2  ;;  %v365_v20 = vadd.f32 %v3628_v48, %v3514_v9  ;;  %v2018_v25 = vld [vmem:[#allocation2 + $0xd0] sm:$0x3] }
 0x148   :  { %1923 = vst.msk [vmem:[%s4227_s4 + $0x60] sm:$0xff] %vm16_vm1, %v1859_v38 }
 0x149   :  { %vm1635_vm14 = vcmp.gt.f32.partialorder %v1571_v58, 0.3  ;;  %v1827_v46 = vmul.f32 0.2, %v1571_v58  ;;  %v1066_v58 = vsel %vm918_vm3, %v1064_v56, %v4245_v41  ;;  %v1169_v2 = vadd.f32 %v986_v37, %v880_v8  ;;  %v2019_v8 = vld [vmem:[#allocation2 + $0x280] sm:$0x3] }
 0x14a   :  { %v1699_v50 = vsel %vm1635_vm14, 1.0, %v4250_v22  ;;  %v1201_v59 = vadd.f32 %v1066_v58, %v912_v51  ;;  %v364_v56 = vadd.f32 %v2018_v25, %v3440_v16  ;;  %v461_v38 = vadd.f32 %v365_v20, %v3124_v36  ;;  %v3658_v25 = vld [vmem:[#allocation2 + $0xe8] sm:$0x3]  ;;  %v3661_v20 = vld [vmem:[#allocation2 + $0x298] sm:$0x3] }
 0x14b   :  { %1763 = vst.msk [vmem:[%s4226_s3 + $0x160] sm:$0xff] %vm16_vm1, %v1699_v50  ;;  %v1891_v63 = vsel %vm1635_vm14, 0.0, %v1827_v46  ;;  %v3636_v46 = vld [vmem:[#allocation2 + $0x288] sm:$0xff]  ;;  %v384_v16 = vadd.f32 %v3558_v29, %v3517_v55  ;;  %v385_v51 = vadd.f32 %v3616_v60, %v3605_v1 }
 0x14c   :  { %v413_v6 = vadd.f32 %v3636_v46, %v3525_v45  ;;  %1955 = vst.msk [vmem:[%s4227_s4 + $0x160] sm:$0xff] %vm16_vm1, %v1891_v63  ;;  %v412_v45 = vadd.f32 %v2019_v8, %v3452_v35  ;;  %v1489_v63 = vmul.f32 %v1436_v24, %v1169_v2  ;;  %v1521_v37 = vmul.f32 %v1436_v24, %v1201_v59 }
 0x14d   :  { %v460_v41 = vadd.f32 %v3658_v25, %v364_v56  ;;  %v670_v0 = vrot.slane %v461_v38, 1  ;;  %v959_v53 = vrot.slane %v461_v38, 2  ;;  %v432_v8 = vadd.f32 %v3566_v40, %v3551_v31 }
 0x14e   :  { %v509_v58 = vadd.f32 %v413_v6, %v3139_v3  ;;  %v508_v35 = vadd.f32 %v3661_v20, %v412_v45  ;;  %v4270_v45 = vmov 0.0   ;;  %v4272_v40 = vrot.slane %v2851_v27, 1 }
 0x14f   :  { %v672_v3 = vsel %vm629_vm2, %v670_v0, %v671_v5  ;;  %v961_v24 = vsel %vm918_vm3, %v959_v53, %v960_v57  ;;  %v668_v59 = vrot.slane %v460_v41, 1  ;;  %v1386_v53 = vpop.permute.xlu1 %1385 }
 0x150   :  { %v750_v22 = vrot.slane %v509_v58, 1  ;;  %v1039_v2 = vrot.slane %v509_v58, 2  ;;  %v748_v6 = vrot.slane %v508_v35, 1  ;;  %v870_v43 = vadd.f32 %v672_v3, %v461_v38  ;;  %v3694_v38 = vld [vmem:[#allocation2 + $0x190] sm:$0x3] }
 0x151   :  { %v669_v17 = vsel %vm629_vm2, %v4272_v40, %v668_v59  ;;  %v957_v59 = vrot.slane %v460_v41, 2  ;;  %v481_v41 = vadd.f32 %v385_v51, %v3694_v38 }
 0x152   :  { %v1159_v3 = vadd.f32 %v961_v24, %v870_v43  ;;  %v3727_v43 = vadd.f32 %v384_v16, %v3692_v12 }
 0x153   :  { %v1233_v9 = vld [vmem:[%s4225_s2 + $0xd0] sm:$0xff] }
 0x154   :  { %v1265_v50 = vld [vmem:[%s4225_s2 + $0x1d0] sm:$0xff]  ;;  %v1553_v7 = vadd.f32 %v1489_v63, %v1233_v9  ;;  %v752_v9 = vsel %vm629_vm2, %v750_v22, %v751_v61  ;;  %v4271_v22 = vrot.slane %v3029_v62, 2  ;;  %v4274_v62 = vrot.slane %v2858_v21, 1 }
 0x155   :  { %v1585_v30 = vadd.f32 %v1521_v37, %v1265_v50  ;;  %v3675_v50 = vld [vmem:[#allocation2 + $0x310] sm:$0x3]  ;;  %v3680_v37 = vld [vmem:[#allocation2 + $0x328] sm:$0x3]  ;;  %v701_v51 = vrot.slane %v3727_v43, 1 }
 0x156   :  { %vm1617_vm15 = vcmp.gt.f32.partialorder %v1553_v7, 0.3  ;;  %v1809_v56 = vmul.f32 0.2, %v1553_v7  ;;  %v902_v7 = vadd.f32 %v752_v9, %v509_v58  ;;  %v1041_v61 = vsel %vm918_vm3, %v1039_v2, %v4271_v22  ;;  %v3705_v9 = vld [vmem:[#allocation2 + $0x338] sm:$0xff] }
 0x157   :  { %vm1649_vm4 = vcmp.gt.f32.partialorder %v1585_v30, 0.3  ;;  %v1681_v63 = vsel %vm1617_vm15, 1.0, %v4270_v45  ;;  %v1841_v0 = vmul.f32 0.2, %v1585_v30  ;;  %v749_v2 = vsel %vm629_vm2, %v4274_v62, %v748_v6 }
 0x158   :  { %v1713_v5 = vsel %vm1649_vm4, 1.0, %v4270_v45  ;;  %1745 = vst.msk [vmem:[%s4226_s3 + $0xd0] sm:$0xff] %vm16_vm1, %v1681_v63  ;;  %v1873_v57 = vsel %vm1617_vm15, 0.0, %v1809_v56  ;;  %v869_v56 = vadd.f32 %v669_v17, %v2851_v27  ;;  %v1191_v40 = vadd.f32 %v1041_v61, %v902_v7 }
 0x159   :  { %1777 = vst.msk [vmem:[%s4226_s3 + $0x1d0] sm:$0xff] %vm16_vm1, %v1713_v5  ;;  %v1905_v58 = vsel %vm1649_vm4, 0.0, %v1841_v0  ;;  %v901_v24 = vadd.f32 %v749_v2, %v2858_v21  ;;  %v1037_v63 = vrot.slane %v508_v35, 2  ;;  %v3715_v5 = vld [vmem:[#allocation2 + $0x340] sm:$0x3]  ;;  %v1479_v6 = vmul.f32 %v1386_v53, %v1159_v3 }
 0x15a   :  { %1937 = vst.msk [vmem:[%s4227_s4 + $0xd0] sm:$0xff] %vm16_vm1, %v1873_v57  ;;  %v433_v0 = vadd.f32 %v3680_v37, %v3675_v50  ;;  %v1511_v35 = vmul.f32 %v1386_v53, %v1191_v40  ;;  %v4275_v57 = vrot.slane %v2851_v27, 2  ;;  %v4276_v22 = vrot.slane %v2858_v21, 2 }
 0x15b   :  { %v3737_v3 = vadd.f32 %v432_v8, %v3705_v9  ;;  %v703_v53 = vrot.slane %v481_v41, 1 }
 0x15c   :  { %v958_v7 = vsel %vm918_vm3, %v4275_v57, %v957_v59  ;;  %v1038_v61 = vsel %vm918_vm3, %v4276_v22, %v1037_v63  ;;  %v529_v16 = vadd.f32 %v433_v0, %v3715_v5  ;;  %v992_v22 = vrot.slane %v481_v41, 2 }
 0x15d   :  { %v1158_v2 = vadd.f32 %v958_v7, %v869_v56  ;;  %v1190_v29 = vadd.f32 %v1038_v61, %v901_v24  ;;  %v781_v8 = vrot.slane %v3737_v3, 1  ;;  %v704_v63 = vsel %vm629_vm2, %v701_v51, %v703_v53  ;;  %v2022_v61 = vld [vmem:[#allocation2 + $0xe0] sm:$0xff] }
 0x15e   :  { %v883_v57 = vadd.f32 %v704_v63, %v3727_v43  ;;  %v4260_v7 = vrot.slane %v3727_v43, 2  ;;  %v1072_v63 = vrot.slane %v529_v16, 2 }
 0x161   :  { %v1223_v30 = vld [vmem:[%s4225_s2 + $0x80] sm:$0xff] }
 0x162   :  { %1969 = vst.msk [vmem:[%s4227_s4 + $0x1d0] sm:$0xff] %vm16_vm1, %v1905_v58  ;;  %v1381_v58 = vpop.permute.xlu0 %1380  ;;  %v1543_v62 = vadd.f32 %v1479_v6, %v1223_v30 }
 0x163   :  { %v1478_v56 = vmul.f32 %v1381_v58, %v1158_v2  ;;  %v1510_v30 = vmul.f32 %v1381_v58, %v1190_v29  ;;  %v2023_v58 = vld [vmem:[#allocation2 + $0xf8] sm:$0xff] }
 0x164   :  { %vm1607_vm0 = vcmp.gt.f32.partialorder %v1543_v62, 0.3  ;;  %v1799_v40 = vmul.f32 0.2, %v1543_v62  ;;  %v369_v62 = vadd.f32 %v2023_v58, %v2022_v61  ;;  %v2026_v61 = vld [vmem:[#allocation2 + $0x2a8] sm:$0xff] }
 0x165   :  { %v1671_v24 = vsel %vm1607_vm0, 1.0, %v4270_v45 }
 0x166   :  { %1735 = vst.msk [vmem:[%s4226_s3 + $0x80] sm:$0xff] %vm16_vm1, %v1671_v24  ;;  %v1863_v6 = vsel %vm1607_vm0, 0.0, %v1799_v40  ;;  %v1451_v24 = vpop.permute.xlu2 %1450 }
 0x169   :  { %v1255_v17 = vld [vmem:[%s4225_s2 + $0x180] sm:$0xff]  ;;  %v1222_v27 = vld [vmem:[%s4225_s2 + $0x78] sm:$0xff] }
 0x16a   :  { %v1575_v12 = vadd.f32 %v1511_v35, %v1255_v17  ;;  %v1254_v21 = vld [vmem:[%s4225_s2 + $0x178] sm:$0xff]  ;;  %v1542_v0 = vadd.f32 %v1478_v56, %v1222_v27  ;;  %v993_v56 = vsel %vm918_vm3, %v4260_v7, %v992_v22  ;;  %v1396_v7 = vpop.permute.xlu0 %1395 }
 0x16b   :  { %v1574_v35 = vadd.f32 %v1510_v30, %v1254_v21  ;;  %1927 = vst.msk [vmem:[%s4227_s4 + $0x80] sm:$0xff] %vm16_vm1, %v1863_v6  ;;  %v4259_v30 = vrot.slane %v3737_v3, 2  ;;  %v3792_v6 = vld [vmem:[#allocation2 + $0x100] sm:$0x3] }
 0x16c   :  { %vm1639_vm5 = vcmp.gt.f32.partialorder %v1575_v12, 0.3  ;;  %v1831_v59 = vmul.f32 0.2, %v1575_v12  ;;  %v783_v12 = vrot.slane %v529_v16, 1 }
 0x16d   :  { %v1703_v17 = vsel %vm1639_vm5, 1.0, %v4270_v45  ;;  %vm1606_vm6 = vcmp.gt.f32.partialorder %v1542_v0, 0.3  ;;  %vm1638_vm7 = vcmp.gt.f32.partialorder %v1574_v35, 0.3 }
 0x16e   :  { %1767 = vst.msk [vmem:[%s4226_s3 + $0x180] sm:$0xff] %vm16_vm1, %v1703_v17  ;;  %v1895_v29 = vsel %vm1639_vm5, 0.0, %v1831_v59  ;;  %v1670_v2 = vsel %vm1606_vm6, 1.0, %v4270_v45  ;;  %v1702_v27 = vsel %vm1638_vm7, 1.0, %v4270_v45  ;;  %v1798_v21 = vmul.f32 0.2, %v1542_v0 }
 0x16f   :  { %1959 = vst.msk [vmem:[%s4227_s4 + $0x180] sm:$0xff] %vm16_vm1, %v1895_v29  ;;  %v784_v53 = vsel %vm629_vm2, %v781_v8, %v783_v12  ;;  %v1830_v41 = vmul.f32 0.2, %v1574_v35  ;;  %v1172_v17 = vadd.f32 %v993_v56, %v883_v57  ;;  %v370_v29 = vadd.f32 %v3792_v6, %v3658_v25  ;;  %v2025_v0 = vld [vmem:[#allocation2 + $0x290] sm:$0xff] }
 0x170   :  { %1734 = vst.msk [vmem:[%s4226_s3 + $0x78] sm:$0xff] %vm16_vm1, %v1670_v2  ;;  %v915_v40 = vadd.f32 %v784_v53, %v3737_v3  ;;  %v1862_v59 = vsel %vm1606_vm6, 0.0, %v1798_v21  ;;  %v417_v16 = vadd.f32 %v2026_v61, %v2025_v0  ;;  %v3804_v57 = vld [vmem:[#allocation2 + $0x2b0] sm:$0x3]  ;;  %v3809_v25 = vadd.f32 %v369_v62, %v3137_v14 }
 0x171   :  { %1766 = vst.msk [vmem:[%s4226_s3 + $0x178] sm:$0xff] %vm16_vm1, %v1702_v27  ;;  %v1894_v12 = vsel %vm1638_vm7, 0.0, %v1830_v41  ;;  %v418_v58 = vadd.f32 %v3804_v57, %v3661_v20  ;;  %v1073_v35 = vsel %vm918_vm3, %v4259_v30, %v1072_v63  ;;  %v1492_v2 = vmul.f32 %v1451_v24, %v1172_v17 }
 0x172   :  { %1926 = vst.msk [vmem:[%s4227_s4 + $0x78] sm:$0xff] %vm16_vm1, %v1862_v59  ;;  %v466_v27 = vadd.f32 %v370_v29, %v3214_v4  ;;  %v368_v21 = vadd.f32 %v3628_v48, %v3124_v36  ;;  %v1204_v53 = vadd.f32 %v1073_v35, %v915_v40  ;;  %v513_v20 = vadd.f32 %v417_v16, %v3158_v11 }
 0x173   :  { %v514_v14 = vadd.f32 %v418_v58, %v3303_v23  ;;  %v676_v62 = vrot.slane %v3809_v25, 1  ;;  %v965_v63 = vrot.slane %v3809_v25, 2 }
 0x174   :  { %v678_v59 = vrot.slane %v466_v27, 1  ;;  %v967_v17 = vrot.slane %v466_v27, 2  ;;  %v1524_v29 = vmul.f32 %v1451_v24, %v1204_v53  ;;  %v1045_v36 = vrot.slane %v513_v20, 2  ;;  %v1401_v27 = vpop.permute.xlu1 %1400  ;;  %v2028_v53 = vld [vmem:[#allocation2 + $0x2a0] sm:$0xff] }
 0x175   :  { %v758_v0 = vrot.slane %v514_v14, 1 }
 0x176   :  { %v679_v11 = vsel %vm629_vm2, %v676_v62, %v678_v59  ;;  %v968_v40 = vsel %vm918_vm3, %v965_v63, %v967_v17  ;;  %v2029_v59 = vld [vmem:[#allocation2 + $0x108] sm:$0xff] }
 0x177   :  { %v464_v17 = vadd.f32 %v2029_v59, %v368_v21 }
 0x179   :  { %v1236_v22 = vld [vmem:[%s4225_s2 + $0xe8] sm:$0xff] }
 0x17a   :  { %1958 = vst.msk [vmem:[%s4227_s4 + $0x178] sm:$0xff] %vm16_vm1, %v1894_v12  ;;  %v1556_v56 = vadd.f32 %v1492_v2, %v1236_v22  ;;  %v756_v12 = vrot.slane %v513_v20, 1  ;;  %v873_v22 = vadd.f32 %v679_v11, %v3809_v25  ;;  %v1047_v2 = vrot.slane %v514_v14, 2  ;;  %v2030_v14 = vld [vmem:[#allocation2 + $0x2b8] sm:$0xff] }
 0x17c   :  { %vm1620_vm8 = vcmp.gt.f32.partialorder %v1556_v56, 0.3  ;;  %v1812_v48 = vmul.f32 0.2, %v1556_v56  ;;  %v759_v58 = vsel %vm629_vm2, %v756_v12, %v758_v0  ;;  %v416_v56 = vadd.f32 %v2028_v53, %v3636_v46 }
 0x17d   :  { %v1684_v16 = vsel %vm1620_vm8, 1.0, %v4270_v45  ;;  %v905_v35 = vadd.f32 %v759_v58, %v513_v20  ;;  %v1162_v25 = vadd.f32 %v968_v40, %v873_v22  ;;  %v1048_v0 = vsel %vm918_vm3, %v1045_v36, %v1047_v2 }
 0x17e   :  { %1748 = vst.msk [vmem:[%s4226_s3 + $0xe8] sm:$0xff] %vm16_vm1, %v1684_v16  ;;  %v1876_v24 = vsel %vm1620_vm8, 0.0, %v1812_v48  ;;  %v512_v46 = vadd.f32 %v2030_v14, %v416_v56  ;;  %v374_v48 = vadd.f32 %v2029_v59, %v3156_v15  ;;  %v964_v15 = vrot.slane %v464_v17, 2 }
 0x17f   :  { %v1194_v40 = vadd.f32 %v1048_v0, %v905_v35  ;;  %v1482_v21 = vmul.f32 %v1401_v27, %v1162_v25 }
 0x180   :  { %v755_v58 = vrot.slane %v512_v46, 1  ;;  %v1044_v22 = vrot.slane %v512_v46, 2  ;;  %v470_v56 = vadd.f32 %v374_v48, %v3500_v54  ;;  %v966_v59 = vsel %vm918_vm3, %v964_v15, %v965_v63 }
 0x181   :  { %v1268_v41 = vld [vmem:[%s4225_s2 + $0x1e8] sm:$0xff]  ;;  %v1514_v2 = vmul.f32 %v1401_v27, %v1194_v40  ;;  %v4277_v40 = vrot.slane %v3364_v18, 1 }
 0x182   :  { %v1588_v61 = vadd.f32 %v1524_v29, %v1268_v41  ;;  %1940 = vst.msk [vmem:[%s4227_s4 + $0xe8] sm:$0xff] %vm16_vm1, %v1876_v24  ;;  %v422_v24 = vadd.f32 %v2030_v14, %v3169_v44  ;;  %v974_v15 = vrot.slane %v470_v56, 2 }
 0x184   :  { %vm1652_vm9 = vcmp.gt.f32.partialorder %v1588_v61, 0.3  ;;  %v1844_v41 = vmul.f32 0.2, %v1588_v61  ;;  %v675_v61 = vrot.slane %v464_v17, 1 }
 0x185   :  { %v1716_v29 = vsel %vm1652_vm9, 1.0, %v4270_v45 }
 0x186   :  { %1780 = vst.msk [vmem:[%s4226_s3 + $0x1e8] sm:$0xff] %vm16_vm1, %v1716_v29  ;;  %v1908_v11 = vsel %vm1652_vm9, 0.0, %v1844_v41  ;;  %v677_v35 = vsel %vm629_vm2, %v675_v61, %v676_v62  ;;  %v757_v41 = vsel %vm629_vm2, %v755_v58, %v756_v12  ;;  %v1046_v29 = vsel %vm918_vm3, %v1044_v22, %v1045_v36 }
 0x187   :  { %v872_v25 = vadd.f32 %v677_v35, %v464_v17  ;;  %v904_v30 = vadd.f32 %v757_v41, %v512_v46  ;;  %v685_v12 = vrot.slane %v470_v56, 1  ;;  %v373_v35 = vadd.f32 %v3792_v6, %v3214_v4 }
 0x189   :  { %v1226_v20 = vld [vmem:[%s4225_s2 + $0x98] sm:$0xff]  ;;  %v1161_v27 = vadd.f32 %v966_v59, %v872_v25  ;;  %v1193_v17 = vadd.f32 %v1046_v29, %v904_v30  ;;  %v1416_v59 = vpop.permute.xlu1 %1415  ;;  %v421_v29 = vadd.f32 %v3804_v57, %v3303_v23 }
 0x18a   :  { %1972 = vst.msk [vmem:[%s4227_s4 + $0x1e8] sm:$0xff] %vm16_vm1, %v1908_v11  ;;  %v1546_v53 = vadd.f32 %v1482_v21, %v1226_v20  ;;  %v518_v20 = vadd.f32 %v422_v24, %v3528_v52  ;;  %v687_v21 = vsel %vm629_vm2, %v685_v12, %v4277_v40  ;;  %v4278_v24 = vrot.slane %v3378_v13, 1  ;;  %v2031_v12 = vld [vmem:[#allocation2 + $0x130] sm:$0x3] }
 0x18b   :  { %v1481_v48 = vmul.f32 %v1396_v7, %v1161_v27  ;;  %v876_v58 = vadd.f32 %v687_v21, %v470_v56 }
 0x18c   :  { %vm1610_vm10 = vcmp.gt.f32.partialorder %v1546_v53, 0.3  ;;  %v1802_v11 = vmul.f32 0.2, %v1546_v53  ;;  %v765_v61 = vrot.slane %v518_v20, 1  ;;  %v1054_v53 = vrot.slane %v518_v20, 2 }
 0x18d   :  { %v1674_v44 = vsel %vm1610_vm10, 1.0, %v4270_v45 }
 0x18e   :  { %1738 = vst.msk [vmem:[%s4226_s3 + $0x98] sm:$0xff] %vm16_vm1, %v1674_v44  ;;  %v1866_v36 = vsel %vm1610_vm10, 0.0, %v1802_v11  ;;  %v4280_v11 = vrot.slane %v3378_v13, 2 }
 0x190   :  { %v1056_v44 = vsel %vm918_vm3, %v1054_v53, %v4280_v11 }
 0x191   :  { %v1258_v16 = vld [vmem:[%s4225_s2 + $0x198] sm:$0xff]  ;;  %v1225_v62 = vld [vmem:[%s4225_s2 + $0x90] sm:$0xff] }
 0x192   :  { %v1578_v0 = vadd.f32 %v1514_v2, %v1258_v16  ;;  %1930 = vst.msk [vmem:[%s4227_s4 + $0x98] sm:$0xff] %vm16_vm1, %v1866_v36  ;;  %v1513_v16 = vmul.f32 %v1396_v7, %v1193_v17  ;;  %v1545_v22 = vadd.f32 %v1481_v48, %v1225_v62  ;;  %v767_v2 = vsel %vm629_vm2, %v765_v61, %v4278_v24 }
 0x193   :  { %v908_v25 = vadd.f32 %v767_v2, %v518_v20  ;;  %v4279_v7 = vrot.slane %v3364_v18, 2  ;;  %v4281_v2 = vrot.slane %v3189_v32, 1 }
 0x194   :  { %vm1642_vm11 = vcmp.gt.f32.partialorder %v1578_v0, 0.3  ;;  %v1834_v63 = vmul.f32 0.2, %v1578_v0  ;;  %vm1609_vm12 = vcmp.gt.f32.partialorder %v1545_v22, 0.3 }
 0x195   :  { %v1706_v14 = vsel %vm1642_vm11, 1.0, %v4270_v45  ;;  %v976_v56 = vsel %vm918_vm3, %v974_v15, %v4279_v7  ;;  %v1801_v0 = vmul.f32 0.2, %v1545_v22  ;;  %v1673_v4 = vsel %vm1609_vm12, 1.0, %v4270_v45  ;;  %v2033_v22 = vld [vmem:[#allocation2 + $0x2d8] sm:$0xff] }
 0x196   :  { %1770 = vst.msk [vmem:[%s4226_s3 + $0x198] sm:$0xff] %vm16_vm1, %v1706_v14  ;;  %v1898_v30 = vsel %vm1642_vm11, 0.0, %v1834_v63  ;;  %v1165_v27 = vadd.f32 %v976_v56, %v876_v58  ;;  %v1197_v62 = vadd.f32 %v1056_v44, %v908_v25  ;;  %v469_v63 = vadd.f32 %v2031_v12, %v373_v35 }
 0x197   :  { %1737 = vst.msk [vmem:[%s4226_s3 + $0x90] sm:$0xff] %vm16_vm1, %v1673_v4  ;;  %v1865_v23 = vsel %vm1609_vm12, 0.0, %v1801_v0  ;;  %v517_v14 = vadd.f32 %v421_v29, %v3305_v28  ;;  %v4282_v35 = vrot.slane %v3189_v32, 2  ;;  %v4283_v7 = vrot.slane %v3197_v39, 1  ;;  %v1411_v4 = vpop.permute.xlu0 %1410 }
 0x198   :  { %v1485_v57 = vmul.f32 %v1416_v59, %v1165_v27  ;;  %v1517_v17 = vmul.f32 %v1416_v59, %v1197_v62  ;;  %v683_v21 = vrot.slane %v469_v63, 1  ;;  %v972_v61 = vrot.slane %v469_v63, 2 }
 0x199   :  { %v1257_v46 = vld [vmem:[%s4225_s2 + $0x190] sm:$0xff]  ;;  %v763_v58 = vrot.slane %v517_v14, 1  ;;  %v1052_v15 = vrot.slane %v517_v14, 2  ;;  %v4284_v44 = vrot.slane %v3197_v39, 2 }
 0x19a   :  { %1962 = vst.msk [vmem:[%s4227_s4 + $0x198] sm:$0xff] %vm16_vm1, %v1898_v30  ;;  %v1577_v41 = vadd.f32 %v1513_v16, %v1257_v46  ;;  %v2032_v46 = vld [vmem:[#allocation2 + $0x128] sm:$0xff]  ;;  %v379_v30 = vadd.f32 %v2031_v12, %v3323_v19  ;;  %v684_v53 = vsel %vm629_vm2, %v4281_v2, %v683_v21  ;;  %v973_v19 = vsel %vm918_vm3, %v4282_v35, %v972_v61 }
 0x19b   :  { %v378_v48 = vadd.f32 %v2032_v46, %v3321_v10  ;;  %v426_v10 = vadd.f32 %v2033_v22, %v3337_v34  ;;  %v764_v56 = vsel %vm629_vm2, %v4283_v7, %v763_v58  ;;  %v875_v29 = vadd.f32 %v684_v53, %v3189_v32  ;;  %v1431_v53 = vpop.permute.xlu1 %1430 }
 0x19c   :  { %vm1641_vm13 = vcmp.gt.f32.partialorder %v1577_v41, 0.3  ;;  %v1833_v6 = vmul.f32 0.2, %v1577_v41  ;;  %v907_v0 = vadd.f32 %v764_v56, %v3197_v39  ;;  %v1053_v27 = vsel %vm918_vm3, %v4284_v44, %v1052_v15 }
 0x19d   :  { %v1705_v20 = vsel %vm1641_vm13, 1.0, %v4270_v45  ;;  %v3961_v62 = vadd.f32 %v378_v48, %v3517_v55  ;;  %v1164_v32 = vadd.f32 %v973_v19, %v875_v29  ;;  %v3969_v39 = vadd.f32 %v426_v10, %v3551_v31  ;;  %v4006_v29 = vld [vmem:[#allocation2 + $0x180] sm:$0xff] }
 0x19e   :  { %1769 = vst.msk [vmem:[%s4226_s3 + $0x190] sm:$0xff] %vm16_vm1, %v1705_v20  ;;  %v1897_v36 = vsel %vm1641_vm13, 0.0, %v1833_v6  ;;  %v427_v6 = vadd.f32 %v3348_v33, %v3305_v28  ;;  %v475_v20 = vadd.f32 %v379_v30, %v3605_v1 }
 0x19f   :  { %v980_v31 = vrot.slane %v3961_v62, 2  ;;  %v1484_v12 = vmul.f32 %v1411_v4, %v1164_v32  ;;  %v1060_v48 = vrot.slane %v3969_v39, 2 }
 0x1a0   :  { %v523_v55 = vadd.f32 %v427_v6, %v3675_v50  ;;  %v982_v46 = vrot.slane %v475_v20, 2  ;;  %v431_v6 = vadd.f32 %v3560_v42, %v3530_v47 }
 0x1a1   :  { %v1229_v18 = vld [vmem:[%s4225_s2 + $0xb0] sm:$0xff] }
 0x1a2   :  { %v1261_v13 = vld [vmem:[%s4225_s2 + $0x1b0] sm:$0xff]  ;;  %v1549_v40 = vadd.f32 %v1485_v57, %v1229_v18  ;;  %v1196_v18 = vadd.f32 %v1053_v27, %v907_v0  ;;  %v773_v14 = vrot.slane %v523_v55, 1  ;;  %v983_v22 = vsel %vm918_vm3, %v980_v31, %v982_v46 }
 0x1a3   :  { %1929 = vst.msk [vmem:[%s4227_s4 + $0x90] sm:$0xff] %vm16_vm1, %v1865_v23  ;;  %v1581_v16 = vadd.f32 %v1517_v17, %v1261_v13  ;;  %v691_v23 = vrot.slane %v3961_v62, 1  ;;  %v2034_v13 = vld [vmem:[#allocation2 + $0x120] sm:$0xff]  ;;  %v771_v17 = vrot.slane %v3969_v39, 1  ;;  %v4008_v0 = vld [vmem:[#allocation2 + $0x330] sm:$0xff] }
 0x1a4   :  { %1961 = vst.msk [vmem:[%s4227_s4 + $0x190] sm:$0xff] %vm16_vm1, %v1897_v36  ;;  %vm1613_vm14 = vcmp.gt.f32.partialorder %v1549_v40, 0.3  ;;  %v1805_v24 = vmul.f32 0.2, %v1549_v40  ;;  %v377_v57 = vadd.f32 %v2034_v13, %v3500_v54  ;;  %v1516_v63 = vmul.f32 %v1411_v4, %v1196_v18 }
 0x1a5   :  { %vm1645_vm15 = vcmp.gt.f32.partialorder %v1581_v16, 0.3  ;;  %v1677_v41 = vsel %vm1613_vm14, 1.0, %v4270_v45  ;;  %v1837_v25 = vmul.f32 0.2, %v1581_v16  ;;  %v693_v36 = vrot.slane %v475_v20, 1 }
 0x1a6   :  { %v1709_v34 = vsel %vm1645_vm15, 1.0, %v4270_v45  ;;  %1741 = vst.msk [vmem:[%s4226_s3 + $0xb0] sm:$0xff] %vm16_vm1, %v1677_v41  ;;  %v1869_v59 = vsel %vm1613_vm14, 0.0, %v1805_v24  ;;  %v1062_v40 = vrot.slane %v523_v55, 2  ;;  %v2035_v16 = vld [vmem:[#allocation2 + $0x2d0] sm:$0xff]  ;;  %v774_v15 = vsel %vm629_vm2, %v771_v17, %v773_v14 }
 0x1a7   :  { %1773 = vst.msk [vmem:[%s4226_s3 + $0x1b0] sm:$0xff] %vm16_vm1, %v1709_v34  ;;  %v1901_v11 = vsel %vm1645_vm15, 0.0, %v1837_v25  ;;  %v694_v30 = vsel %vm629_vm2, %v691_v23, %v693_v36  ;;  %v425_v58 = vadd.f32 %v2035_v16, %v3528_v52  ;;  %v911_v2 = vadd.f32 %v774_v15, %v3969_v39 }
 0x1a8   :  { %1933 = vst.msk [vmem:[%s4227_s4 + $0xb0] sm:$0xff] %vm16_vm1, %v1869_v59  ;;  %v879_v54 = vadd.f32 %v694_v30, %v3961_v62  ;;  %v1063_v10 = vsel %vm918_vm3, %v1060_v48, %v1062_v40  ;;  %v473_v34 = vadd.f32 %v377_v57, %v3502_v26  ;;  %v383_v4 = vadd.f32 %v3549_v49, %v3502_v26  ;;  %v1426_v40 = vpop.permute.xlu0 %1425 }
 0x1a9   :  { %1965 = vst.msk [vmem:[%s4227_s4 + $0x1b0] sm:$0xff] %vm16_vm1, %v1901_v11  ;;  %v1200_v7 = vadd.f32 %v1063_v10, %v911_v2  ;;  %v521_v59 = vadd.f32 %v425_v58, %v3530_v47  ;;  %v527_v47 = vadd.f32 %v431_v6, %v4008_v0 }
 0x1aa   :  { %v1168_v41 = vadd.f32 %v983_v22, %v879_v54  ;;  %v690_v32 = vrot.slane %v473_v34, 1  ;;  %v979_v20 = vrot.slane %v473_v34, 2  ;;  %v479_v26 = vadd.f32 %v383_v4, %v4006_v29 }
 0x1ab   :  { %v1520_v62 = vmul.f32 %v1431_v53, %v1200_v7  ;;  %v770_v18 = vrot.slane %v521_v59, 1  ;;  %v780_v58 = vrot.slane %v527_v47, 1  ;;  %v1069_v10 = vrot.slane %v527_v47, 2 }
 0x1ac   :  { %v1488_v27 = vmul.f32 %v1431_v53, %v1168_v41  ;;  %v981_v13 = vsel %vm918_vm3, %v979_v20, %v980_v31  ;;  %v700_v16 = vrot.slane %v479_v26, 1  ;;  %v989_v15 = vrot.slane %v479_v26, 2  ;;  %v2037_v41 = vld [vmem:[#allocation2 + $0x2f8] sm:$0x3] }
 0x1ad   :  { %v772_v55 = vsel %vm629_vm2, %v770_v18, %v771_v17 }
 0x1ae   :  { %v702_v53 = vsel %vm629_vm2, %v700_v16, %v701_v51  ;;  %v1446_v51 = vpop.permute.xlu1 %1445  ;;  %v285_v16 = vld [vmem:[#allocation2 + $0x1a0] sm:$0xff] }
 0x1b0   :  { %v1228_v28 = vld [vmem:[%s4225_s2 + $0xa8] sm:$0xff] }
 0x1b1   :  { %v1260_v33 = vld [vmem:[%s4225_s2 + $0x1a8] sm:$0xff]  ;;  %v1548_v21 = vadd.f32 %v1484_v12, %v1228_v28  ;;  %v1059_v28 = vrot.slane %v521_v59, 2 }
 0x1b2   :  { %v1580_v61 = vadd.f32 %v1516_v63, %v1260_v33  ;;  %v1232_v56 = vld [vmem:[%s4225_s2 + $0xc8] sm:$0xff]  ;;  %v692_v33 = vsel %vm629_vm2, %v690_v32, %v691_v23  ;;  %v910_v63 = vadd.f32 %v772_v55, %v521_v59  ;;  %v4286_v59 = vrot.slane %v3737_v3, 2 }
 0x1b3   :  { %vm1612_vm4 = vcmp.gt.f32.partialorder %v1548_v21, 0.3  ;;  %v1804_v24 = vmul.f32 0.2, %v1548_v21  ;;  %v1264_v44 = vld [vmem:[%s4225_s2 + $0x1c8] sm:$0xff]  ;;  %v1552_v39 = vadd.f32 %v1488_v27, %v1232_v56  ;;  %v878_v12 = vadd.f32 %v692_v33, %v473_v34  ;;  %v4287_v27 = vld [vmem:[#allocation3_spill] sm:$0xff] }
 0x1b4   :  { %vm1644_vm0 = vcmp.gt.f32.partialorder %v1580_v61, 0.3  ;;  %v1676_v35 = vsel %vm1612_vm4, 1.0, %v4270_v45  ;;  %v1836_v52 = vmul.f32 0.2, %v1580_v61  ;;  %v1584_v42 = vadd.f32 %v1520_v62, %v1264_v44 }
 0x1b5   :  { %v1708_v19 = vsel %vm1644_vm0, 1.0, %v4270_v45  ;;  %1740 = vst.msk [vmem:[%s4226_s3 + $0xa8] sm:$0xff] %vm16_vm1, %v1676_v35  ;;  %v1868_v25 = vsel %vm1612_vm4, 0.0, %v1804_v24  ;;  %vm1616_vm5 = vcmp.gt.f32.partialorder %v1552_v39, 0.3  ;;  %v1061_v46 = vsel %vm918_vm3, %v1059_v28, %v1060_v48 }
 0x1b6   :  { %1772 = vst.msk [vmem:[%s4226_s3 + $0x1a8] sm:$0xff] %vm16_vm1, %v1708_v19  ;;  %v1900_v11 = vsel %vm1644_vm0, 0.0, %v1836_v52  ;;  %v1808_v57 = vmul.f32 0.2, %v1552_v39  ;;  %vm1648_vm6 = vcmp.gt.f32.partialorder %v1584_v42, 0.3  ;;  %v1167_v31 = vadd.f32 %v981_v13, %v878_v12 }
 0x1b7   :  { %1932 = vst.msk [vmem:[%s4227_s4 + $0xa8] sm:$0xff] %vm16_vm1, %v1868_v25  ;;  %v1680_v36 = vsel %vm1616_vm5, 1.0, %v4270_v45  ;;  %v1840_v14 = vmul.f32 0.2, %v1584_v42  ;;  %v1712_v21 = vsel %vm1648_vm6, 1.0, %v4270_v45  ;;  %v1199_v17 = vadd.f32 %v1061_v46, %v910_v63  ;;  %v4289_v63 = vld [vmem:[#allocation5_spill] sm:$0xff] }
 0x1b8   :  { %1964 = vst.msk [vmem:[%s4227_s4 + $0x1a8] sm:$0xff] %vm16_vm1, %v1900_v11  ;;  %v1872_v23 = vsel %vm1616_vm5, 0.0, %v1808_v57  ;;  %v1487_v54 = vmul.f32 %v1426_v40, %v1167_v31  ;;  %v2036_v24 = vld [vmem:[#allocation2 + $0x148] sm:$0x3]  ;;  %v782_v35 = vsel %vm629_vm2, %v780_v58, %v781_v8  ;;  %v4285_v19 = vrot.slane %v3727_v43, 2  ;;  %v4288_v43 = vld [vmem:[#allocation7_spill] sm:$0xff] }
 0x1b9   :  { %1744 = vst.msk [vmem:[%s4226_s3 + $0xc8] sm:$0xff] %vm16_vm1, %v1680_v36  ;;  %v1904_v48 = vsel %vm1648_vm6, 0.0, %v1840_v14  ;;  %v1519_v22 = vmul.f32 %v1426_v40, %v1199_v17  ;;  %v382_v2 = vadd.f32 %v2036_v24, %v3605_v1  ;;  %v430_v1 = vadd.f32 %v2037_v41, %v3675_v50  ;;  %v4291_v46 = vld [vmem:[#allocation6_spill] sm:$0xff]  ;;  %v286_v58 = vld [vmem:[#allocation2 + $0x1a8] sm:$0x3] }
 0x1ba   :  { %1776 = vst.msk [vmem:[%s4226_s3 + $0x1c8] sm:$0xff] %vm16_vm1, %v1712_v21  ;;  %v991_v52 = vsel %vm918_vm3, %v989_v15, %v4285_v19  ;;  %v882_v56 = vadd.f32 %v702_v53, %v479_v26  ;;  %v914_v34 = vadd.f32 %v782_v35, %v527_v47  ;;  %v1071_v11 = vsel %vm918_vm3, %v1069_v10, %v4286_v59  ;;  %v4295_v10 = vld [vmem:[#allocation4_spill] sm:$0xff]  ;;  %v339_v19 = vld [vmem:[#allocation2 + $0x350] sm:$0xff] }
 0x1bb   :  { %v478_v44 = vadd.f32 %v382_v2, %v3616_v60  ;;  %v526_v8 = vadd.f32 %v430_v1, %v3680_v37  ;;  %v387_v4 = vadd.f32 %v4288_v43, %v4287_v27  ;;  %v4290_v36 = vrot.slane %v4289_v63, 1 }
 0x1bc   :  { %v1171_v50 = vadd.f32 %v991_v52, %v882_v56  ;;  %v1203_v3 = vadd.f32 %v1071_v11, %v914_v34  ;;  %v4292_v40 = vrot.slane %v4291_v46, 1  ;;  %v435_v24 = vadd.f32 %v3705_v9, %v4295_v10 }
 0x1bd   :  { %v698_v47 = vrot.slane %v478_v44, 1  ;;  %v778_v42 = vrot.slane %v526_v8, 1  ;;  %v987_v13 = vrot.slane %v478_v44, 2  ;;  %v1067_v57 = vrot.slane %v526_v8, 2 }
 0x1be   :  { %v1491_v26 = vmul.f32 %v1446_v51, %v1171_v50  ;;  %v1523_v55 = vmul.f32 %v1446_v51, %v1203_v3  ;;  %v436_v9 = vadd.f32 %v3715_v5, %v3680_v37  ;;  %v483_v59 = vadd.f32 %v387_v4, %v285_v16 }
 0x1bf   :  { %v1231_v61 = vld [vmem:[%s4225_s2 + $0xc0] sm:$0xff]  ;;  %v699_v14 = vsel %vm629_vm2, %v4290_v36, %v698_v47  ;;  %v779_v21 = vsel %vm629_vm2, %v4292_v40, %v778_v42  ;;  %v531_v37 = vadd.f32 %v435_v24, %v339_v19  ;;  %v386_v44 = vadd.f32 %v4006_v29, %v3549_v49  ;;  %v2038_v36 = vld [vmem:[#allocation2 + $0x318] sm:$0xff] }
 0x1c0   :  { %v1263_v30 = vld [vmem:[%s4225_s2 + $0x1c0] sm:$0xff]  ;;  %v1551_v25 = vadd.f32 %v1487_v54, %v1231_v61  ;;  %v881_v17 = vadd.f32 %v699_v14, %v4289_v63  ;;  %v913_v61 = vadd.f32 %v779_v21, %v4291_v46  ;;  %v1441_v54 = vpop.permute.xlu0 %1440  ;;  %v706_v27 = vrot.slane %v483_v59, 1 }
 0x1c1   :  { %1936 = vst.msk [vmem:[%s4227_s4 + $0xc8] sm:$0xff] %vm16_vm1, %v1872_v23  ;;  %v1583_v7 = vadd.f32 %v1519_v22, %v1263_v30  ;;  %v388_v23 = vadd.f32 %v3694_v38, %v3616_v60  ;;  %v4294_v60 = vrot.slane %v4291_v46, 2  ;;  %v340_v22 = vld [vmem:[#allocation2 + $0x358] sm:$0x3]  ;;  %v995_v4 = vrot.slane %v483_v59, 2 }
 0x1c2   :  { %1968 = vst.msk [vmem:[%s4227_s4 + $0x1c8] sm:$0xff] %vm16_vm1, %v1904_v48  ;;  %vm1615_vm7 = vcmp.gt.f32.partialorder %v1551_v25, 0.3  ;;  %v1807_v6 = vmul.f32 0.2, %v1551_v25  ;;  %v4293_v48 = vrot.slane %v4289_v63, 2  ;;  %v532_v5 = vadd.f32 %v436_v9, %v340_v22  ;;  %v1461_v63 = vpop.permute.xlu1 %1460 }
 0x1c3   :  { %vm1647_vm8 = vcmp.gt.f32.partialorder %v1583_v7, 0.3  ;;  %v1679_v62 = vsel %vm1615_vm7, 1.0, %v4270_v45  ;;  %v1839_v18 = vmul.f32 0.2, %v1583_v7  ;;  %v1068_v38 = vsel %vm918_vm3, %v4294_v60, %v1067_v57 }
 0x1c4   :  { %v1711_v32 = vsel %vm1647_vm8, 1.0, %v4270_v45  ;;  %1743 = vst.msk [vmem:[%s4226_s3 + $0xc0] sm:$0xff] %vm16_vm1, %v1679_v62  ;;  %v1871_v39 = vsel %vm1615_vm7, 0.0, %v1807_v6  ;;  %v988_v30 = vsel %vm918_vm3, %v4293_v48, %v987_v13  ;;  %v1202_v1 = vadd.f32 %v1068_v38, %v913_v61 }
 0x1c5   :  { %1775 = vst.msk [vmem:[%s4226_s3 + $0x1c0] sm:$0xff] %vm16_vm1, %v1711_v32  ;;  %v1903_v33 = vsel %vm1647_vm8, 0.0, %v1839_v18  ;;  %v1170_v35 = vadd.f32 %v988_v30, %v881_v17  ;;  %v484_v11 = vadd.f32 %v388_v23, %v286_v58  ;;  %v786_v50 = vrot.slane %v531_v37, 1 }
 0x1c6   :  { %v1522_v51 = vmul.f32 %v1441_v54, %v1202_v1  ;;  %v788_v62 = vrot.slane %v532_v5, 1  ;;  %v434_v14 = vadd.f32 %v2038_v36, %v4008_v0 }
 0x1c7   :  { %v1490_v34 = vmul.f32 %v1441_v54, %v1170_v35  ;;  %v708_v43 = vrot.slane %v484_v11, 1  ;;  %v997_v32 = vrot.slane %v484_v11, 2 }
 0x1c8   :  { %v1456_v19 = vpop.permute.xlu0 %1455 }
 0x1c9   :  { %v1235_v20 = vld [vmem:[%s4225_s2 + $0xe0] sm:$0xff]  ;;  %v709_v3 = vsel %vm629_vm2, %v706_v27, %v708_v43  ;;  %v998_v57 = vsel %vm918_vm3, %v995_v4, %v997_v32 }
 0x1ca   :  { %v1267_v28 = vld [vmem:[%s4225_s2 + $0x1e0] sm:$0xff]  ;;  %v1555_v12 = vadd.f32 %v1491_v26, %v1235_v20  ;;  %v1075_v20 = vrot.slane %v531_v37, 2  ;;  %v885_v42 = vadd.f32 %v709_v3, %v483_v59 }
 0x1cb   :  { %1935 = vst.msk [vmem:[%s4227_s4 + $0xc0] sm:$0xff] %vm16_vm1, %v1871_v39  ;;  %v1587_v31 = vadd.f32 %v1523_v55, %v1267_v28  ;;  %v789_v39 = vsel %vm629_vm2, %v786_v50, %v788_v62  ;;  %v284_v28 = vld [vmem:[#allocation2 + $0x198] sm:$0xff]  ;;  %v338_v55 = vld [vmem:[#allocation2 + $0x348] sm:$0xff] }
 0x1cc   :  { %1967 = vst.msk [vmem:[%s4227_s4 + $0x1c0] sm:$0xff] %vm16_vm1, %v1903_v33  ;;  %vm1619_vm9 = vcmp.gt.f32.partialorder %v1555_v12, 0.3  ;;  %v1811_v15 = vmul.f32 0.2, %v1555_v12  ;;  %v917_v33 = vadd.f32 %v789_v39, %v531_v37  ;;  %v1077_v12 = vrot.slane %v532_v5, 2 }
 0x1cd   :  { %vm1651_vm10 = vcmp.gt.f32.partialorder %v1587_v31, 0.3  ;;  %v1683_v2 = vsel %vm1619_vm9, 1.0, %v4270_v45  ;;  %v1843_v53 = vmul.f32 0.2, %v1587_v31  ;;  %v1174_v46 = vadd.f32 %v998_v57, %v885_v42 }
 0x1ce   :  { %v1715_v52 = vsel %vm1651_vm10, 1.0, %v4270_v45  ;;  %1747 = vst.msk [vmem:[%s4226_s3 + $0xe0] sm:$0xff] %vm16_vm1, %v1683_v2  ;;  %v1875_v41 = vsel %vm1619_vm9, 0.0, %v1811_v15  ;;  %v482_v40 = vadd.f32 %v386_v44, %v284_v28  ;;  %v1078_v21 = vsel %vm918_vm3, %v1075_v20, %v1077_v12 }
 0x1cf   :  { %1779 = vst.msk [vmem:[%s4226_s3 + $0x1e0] sm:$0xff] %vm16_vm1, %v1715_v52  ;;  %v1907_v7 = vsel %vm1651_vm10, 0.0, %v1843_v53  ;;  %v530_v31 = vadd.f32 %v434_v14, %v338_v55  ;;  %v1206_v0 = vadd.f32 %v1078_v21, %v917_v33  ;;  %v1494_v17 = vmul.f32 %v1461_v63, %v1174_v46 }
 0x1d0   :  { %v705_v61 = vrot.slane %v482_v40, 1  ;;  %v994_v48 = vrot.slane %v482_v40, 2 }
 0x1d1   :  { %v785_v16 = vrot.slane %v530_v31, 1  ;;  %v1074_v58 = vrot.slane %v530_v31, 2  ;;  %v1526_v15 = vmul.f32 %v1461_v63, %v1206_v0 }
 0x1d2   :  { %v707_v38 = vsel %vm629_vm2, %v705_v61, %v706_v27  ;;  %v996_v54 = vsel %vm918_vm3, %v994_v48, %v995_v4 }
 0x1d3   :  { %v1234_v25 = vld [vmem:[%s4225_s2 + $0xd8] sm:$0xff]  ;;  %v787_v22 = vsel %vm629_vm2, %v785_v16, %v786_v50  ;;  %v884_v10 = vadd.f32 %v707_v38, %v482_v40  ;;  %v1076_v24 = vsel %vm918_vm3, %v1074_v58, %v1075_v20 }
 0x1d4   :  { %v1266_v56 = vld [vmem:[%s4225_s2 + $0x1d8] sm:$0xff]  ;;  %v1554_v8 = vadd.f32 %v1490_v34, %v1234_v25  ;;  %v916_v35 = vadd.f32 %v787_v22, %v530_v31 }
 0x1d5   :  { %1939 = vst.msk [vmem:[%s4227_s4 + $0xe0] sm:$0xff] %vm16_vm1, %v1875_v41  ;;  %v1586_v6 = vadd.f32 %v1522_v51, %v1266_v56  ;;  %v1173_v41 = vadd.f32 %v996_v54, %v884_v10 }
 0x1d6   :  { %1971 = vst.msk [vmem:[%s4227_s4 + $0x1e0] sm:$0xff] %vm16_vm1, %v1907_v7  ;;  %vm1618_vm11 = vcmp.gt.f32.partialorder %v1554_v8, 0.3  ;;  %v1810_v18 = vmul.f32 0.2, %v1554_v8  ;;  %v1205_v7 = vadd.f32 %v1076_v24, %v916_v35 }
 0x1d7   :  { %vm1650_vm12 = vcmp.gt.f32.partialorder %v1586_v6, 0.3  ;;  %v1682_v49 = vsel %vm1618_vm11, 1.0, %v4270_v45  ;;  %v1842_v29 = vmul.f32 0.2, %v1586_v6  ;;  %v1493_v59 = vmul.f32 %v1456_v19, %v1173_v41 }
 0x1d8   :  { %v1714_v26 = vsel %vm1650_vm12, 1.0, %v4270_v45  ;;  %1746 = vst.msk [vmem:[%s4226_s3 + $0xd8] sm:$0xff] %vm16_vm1, %v1682_v49  ;;  %v1874_v47 = vsel %vm1618_vm11, 0.0, %v1810_v18  ;;  %v1525_v51 = vmul.f32 %v1456_v19, %v1205_v7 }
 0x1d9   :  { %1778 = vst.msk [vmem:[%s4226_s3 + $0x1d8] sm:$0xff] %vm16_vm1, %v1714_v26  ;;  %v1906_v13 = vsel %vm1650_vm12, 0.0, %v1842_v29 }
 0x1da   :  { %1938 = vst.msk [vmem:[%s4227_s4 + $0xd8] sm:$0xff] %vm16_vm1, %v1874_v47 }
 0x1db   :  { %1970 = vst.msk [vmem:[%s4227_s4 + $0x1d8] sm:$0xff] %vm16_vm1, %v1906_v13 }
 0x1e2   :  { %v1238_v23 = vld [vmem:[%s4225_s2 + $0xf8] sm:$0xff]  ;;  %v1237_v1 = vld [vmem:[%s4225_s2 + $0xf0] sm:$0xff] }
 0x1e3   :  { %v1270_v30 = vld [vmem:[%s4225_s2 + $0x1f8] sm:$0xff]  ;;  %v1558_v60 = vadd.f32 %v1494_v17, %v1238_v23  ;;  %v1557_v37 = vadd.f32 %v1493_v59, %v1237_v1 }
 0x1e4   :  { %v1590_v2 = vadd.f32 %v1526_v15, %v1270_v30 }
 0x1e5   :  { %vm1622_vm13 = vcmp.gt.f32.partialorder %v1558_v60, 0.3  ;;  %v1814_v53 = vmul.f32 0.2, %v1558_v60  ;;  %vm1621_vm2 = vcmp.gt.f32.partialorder %v1557_v37, 0.3 }
 0x1e6   :  { %v1686_v52 = vsel %vm1622_vm13, 1.0, %v4270_v45  ;;  %vm1654_vm14 = vcmp.gt.f32.partialorder %v1590_v2, 0.3  ;;  %v1846_v25 = vmul.f32 0.2, %v1590_v2  ;;  %v1685_v8 = vsel %vm1621_vm2, 1.0, %v4270_v45 }
 0x1e7   :  { %1750 = vst.msk [vmem:[%s4226_s3 + $0xf8] sm:$0xff] %vm16_vm1, %v1686_v52  ;;  %v1878_v9 = vsel %vm1622_vm13, 0.0, %v1814_v53  ;;  %v1718_v56 = vsel %vm1654_vm14, 1.0, %v4270_v45  ;;  %v1813_v44 = vmul.f32 0.2, %v1557_v37 }
 0x1e8   :  { %1942 = vst.msk [vmem:[%s4227_s4 + $0xf8] sm:$0xff] %vm16_vm1, %v1878_v9  ;;  %v1910_v11 = vsel %vm1654_vm14, 0.0, %v1846_v25 }
 0x1e9   :  { %1782 = vst.msk [vmem:[%s4226_s3 + $0x1f8] sm:$0xff] %vm16_vm1, %v1718_v56  ;;  %v1877_v4 = vsel %vm1621_vm2, 0.0, %v1813_v44 }
 0x1ea   :  { %1749 = vst.msk [vmem:[%s4226_s3 + $0xf0] sm:$0xff] %vm16_vm1, %v1685_v8 }
 0x1ef   :  { %v1269_v34 = vld [vmem:[%s4225_s2 + $0x1f0] sm:$0xff] }
 0x1f0   :  { %1974 = vst.msk [vmem:[%s4227_s4 + $0x1f8] sm:$0xff] %vm16_vm1, %v1910_v11  ;;  %v1589_v5 = vadd.f32 %v1525_v51, %v1269_v34 }
 0x1f1   :  { %1941 = vst.msk [vmem:[%s4227_s4 + $0xf0] sm:$0xff] %vm16_vm1, %v1877_v4 }
 0x1f2   :  { %vm1653_vm3 = vcmp.gt.f32.partialorder %v1589_v5, 0.3  ;;  %v1845_v27 = vmul.f32 0.2, %v1589_v5 }
 0x1f3   :  { %v1717_v43 = vsel %vm1653_vm3, 1.0, %v4270_v45 }
 0x1f4   :  { %1781 = vst.msk [vmem:[%s4226_s3 + $0x1f0] sm:$0xff] %vm16_vm1, %v1717_v43  ;;  %v1909_v6 = vsel %vm1653_vm3, 0.0, %v1845_v27 }
 0x1f5   :  { %1973 = vst.msk [vmem:[%s4227_s4 + $0x1f0] sm:$0xff] %vm16_vm1, %v1909_v6 }

</bundles_post_ra>
